<compile_context>
chip_gen: v7x
topology: tpu7x:2x2x1
jax: 0.10.0
libtpu: 0.0.40
codegen_flags: <defaults>
</compile_context>

<pallas_src>
import functools

import jax
import jax.numpy as jnp
from jax.experimental import pallas as pl
from jax.experimental.pallas import tpu as pltpu


def _round_up(x, m):
    return (x + m - 1) // m * m


def _supcon_kernel(lab_q_ref, lab_k_ref, feat_q_ref, feat_k_ref, loss_ref,
                   qn_ref, m_ref, d_ref, s_ref, p_ref, *,
                   n_valid, inv_temp, out_scale, tile_cols):
    j = pl.program_id(1)

    @pl.when(j == 0)
    def _init():
        # Normalize this row block once per row block, cache as bf16 for the MXU.
        q = feat_q_ref[...]
        q = jnp.where(jnp.isnan(q), jnp.float32(0.0), q)
        sq = jnp.sum(q * q, axis=1, keepdims=True)
        inv_nq = jax.lax.rsqrt(jnp.maximum(sq, jnp.float32(1e-24)))
        qn_ref[...] = (q * inv_nq).astype(jnp.bfloat16)
        m_ref[...] = jnp.full(m_ref.shape, -1e30, jnp.float32)
        d_ref[...] = jnp.zeros(d_ref.shape, jnp.float32)
        s_ref[...] = jnp.zeros(s_ref.shape, jnp.float32)
        p_ref[...] = jnp.zeros(p_ref.shape, jnp.float32)

    # Normalize the current column block (cost ~ (TN*D) mults, ~1/TM of the matmul).
    k = feat_k_ref[...]
    k = jnp.where(jnp.isnan(k), jnp.float32(0.0), k)
    sk = jnp.sum(k * k, axis=1, keepdims=True)
    inv_nk = jax.lax.rsqrt(jnp.maximum(sk, jnp.float32(1e-24)))
    kn = (k * inv_nk).astype(jnp.bfloat16)                       # (TN, D)

    # Similarity tile on the MXU: bf16 inputs, f32 accumulation, 1/T as a multiply.
    sim = jax.lax.dot_general(qn_ref[...], kn, (((1,), (1,)), ((), ())),
                              preferred_element_type=jnp.float32)
    sim = sim * jnp.float32(inv_temp)                            # (TM, TN)

    tm = sim.shape[0]
    col = jax.lax.broadcasted_iota(jnp.int32, (tm, tile_cols), 1) + j * tile_cols
    valid = col < n_valid                                        # mask padded columns
    pos = jnp.logical_and(lab_q_ref[...] == lab_k_ref[...], valid).astype(jnp.float32)

    sim_m = jnp.where(valid, sim, jnp.float32(-1e30))
    m_new = jnp.maximum(m_ref[...], jnp.max(sim_m, axis=1, keepdims=True))  # (TM,1)
    alpha = jnp.exp(m_ref[...] - m_new)
    e = jnp.exp(sim_m - m_new)                                   # 0 for padded cols

    # Negatives-only denominator (faithful to the reference's dead '+' line),
    # without materializing a neg_mask: rowsum(e) - rowsum(e*pos).
    d_ref[...] = alpha * d_ref[...] + (jnp.sum(e, axis=1, keepdims=True)
                                       - jnp.sum(e * pos, axis=1, keepdims=True))
    # Sum of raw positive logits needs no rescaling (the max cancels analytically).
    s_ref[...] = s_ref[...] + jnp.sum(sim * pos, axis=1, keepdims=True)
    p_ref[...] = p_ref[...] + jnp.sum(pos, axis=1, keepdims=True)
    m_ref[...] = m_new

    @pl.when(j == pl.num_programs(1) - 1)
    def _finalize():
        p = p_ref[...]
        # log(sum_neg exp(sim)) = m + log(d).  If a row has zero negatives this is
        # -inf, exactly like the PyTorch reference (no clamp added, by design).
        log_den = m_ref[...] + jnp.log(d_ref[...])
        row = s_ref[...] - p * log_den                           # sum_pos log_prob
        safe_p = jnp.where(p > 0, p, jnp.float32(1.0))
        per_row = jnp.where(p > 0, row / safe_p, jnp.float32(0.0))
        loss_ref[...] = (-per_row) * jnp.float32(out_scale)


def supcon_loss(features, labels, temperature=0.7, scale_by_temperature=True,
                tile_rows=128, tile_cols=128):
    """features: (B, ...) float; labels: (B,) int. Returns scalar f32 loss."""
    # TODO(synk): only the `labels` path of forward() is exposed; the explicit
    # `mask=` and labels=None (identity-mask) branches are not implemented.
    B = features.shape[0]
    f = features.reshape(B, -1).astype(jnp.float32)
    D = f.shape[1]

    # Pad to lane-dense multiples of 128; zero rows/cols change no norm or dot.
    B_pad = _round_up(B, max(tile_rows, tile_cols))
    D_pad = _round_up(D, 128)
    f_pad = jnp.pad(f, ((0, B_pad - B), (0, D_pad - D)))
    lab = jnp.pad(labels.astype(jnp.int32), (0, B_pad - B))      # pad value irrelevant
    lab_col = lab.reshape(B_pad, 1)
    lab_row = lab.reshape(1, B_pad)

    ni = B_pad // tile_rows
    nj = B_pad // tile_cols

    kernel = functools.partial(
        _supcon_kernel,
        n_valid=B,
        inv_temp=1.0 / float(temperature),
        out_scale=float(temperature) if scale_by_temperature else 1.0,
        tile_cols=tile_cols)

    grid_spec = pltpu.PrefetchScalarGridSpec(
        num_scalar_prefetch=0,
        grid=(ni, nj),                                           # reduction axis last
        in_specs=[
            pl.BlockSpec((tile_rows, 1), lambda i, j: (i, 0)),   # row-block labels
            pl.BlockSpec((1, tile_cols), lambda i, j: (0, j)),   # col-block labels
            pl.BlockSpec((tile_rows, D_pad), lambda i, j: (i, 0)),  # row-block feats
            pl.BlockSpec((tile_cols, D_pad), lambda i, j: (j, 0)),  # col-block feats
        ],
        out_specs=pl.BlockSpec((tile_rows, 1), lambda i, j: (i, 0)),
        scratch_shapes=[
            pltpu.VMEM((tile_rows, D_pad), jnp.bfloat16),        # cached normalized q
            pltpu.VMEM((tile_rows, 1), jnp.float32),             # m (running max)
            pltpu.VMEM((tile_rows, 1), jnp.float32),             # d (neg denominator)
            pltpu.VMEM((tile_rows, 1), jnp.float32),             # s (sum pos logits)
            pltpu.VMEM((tile_rows, 1), jnp.float32),             # p (num positives)
        ])

    per_row_loss = pl.pallas_call(
        kernel,
        out_shape=jax.ShapeDtypeStruct((B_pad, 1), jnp.float32),
        grid_spec=grid_spec,
        compiler_params=pltpu.CompilerParams(
            dimension_semantics=("parallel", "arbitrary"),
            vmem_limit_bytes=48 * 1024 * 1024),
    )(lab_col, lab_row, f_pad, f_pad)

    # Every real row has >=1 positive (its own diagonal), so the reference's
    # num_pos>0 filter keeps all B rows: the mean is just over the first B rows.
    return jnp.mean(per_row_loss[:B, 0])


def _reference_supcon(features, labels, temperature=0.7, scale_by_temperature=True):
    """Pure-JAX f32 reference mirroring the PyTorch code (incl. its dead '+' line)."""
    B = features.shape[0]
    f = features.reshape(B, -1).astype(jnp.float32)
    f = jnp.where(jnp.isnan(f), 0.0, f)
    fn = f / jnp.maximum(jnp.linalg.norm(f, axis=1, keepdims=True), 1e-12)
    sim = (fn @ fn.T) / temperature
    lab = labels.reshape(-1, 1)
    pos = (lab == lab.T).astype(jnp.float32)
    neg = 1.0 - pos
    logits = sim - jnp.max(sim, axis=1, keepdims=True)
    exp_logits = jnp.exp(logits)
    denom = jnp.sum(exp_logits * neg, axis=1, keepdims=True)
    log_probs = logits - jnp.log(denom)
    num_pos = jnp.sum(pos, axis=1)
    row_sum = jnp.sum(log_probs * pos, axis=1)
    valid = num_pos > 0
    per_row = jnp.where(valid, row_sum / jnp.where(valid, num_pos, 1.0), 0.0)
    loss_rows = -per_row
    if scale_by_temperature:
        loss_rows = loss_rows * temperature
    return jnp.sum(loss_rows * valid) / jnp.sum(valid)


if __name__ == "__main__":
    key = jax.random.PRNGKey(0)
    # features shaped like NCHW activations: (batch=8, channels=4, h=4, w=4)
    features = jax.random.normal(key, (8, 4, 4, 4), dtype=jnp.float32)
    # deterministic labels with repeated classes (so positives exist per row)
    labels = jnp.array([0, 1, 0, 1, 2, 2, 0, 1], dtype=jnp.int32)

    loss = supcon_loss(features, labels, temperature=0.7,
                       scale_by_temperature=True)
    loss = jax.block_until_ready(loss)

    ref = _reference_supcon(features, labels, temperature=0.7,
                            scale_by_temperature=True)
    # bf16 MXU inputs (f32 accumulation) vs pure-f32 reference -> loose tolerance.
    assert jnp.allclose(loss, ref, rtol=3e-2, atol=3e-2), (loss, ref)

    print("KERNEL_OK")
</pallas_src>

<mosaic_0001>
module attributes {stable_mosaic.version = 11 : i64} {
  func.func @_supcon_kernel(%arg0: i32, %arg1: i32, %arg2: memref<128x1xi32, #tpu.memory_space<vmem>>, %arg3: memref<1x128xi32, #tpu.memory_space<vmem>>, %arg4: memref<128x128xf32, #tpu.memory_space<vmem>>, %arg5: memref<128x128xf32, #tpu.memory_space<vmem>>, %arg6: memref<128x1xf32, #tpu.memory_space<vmem>>, %arg7: memref<128x128xbf16, #tpu.memory_space<vmem>>, %arg8: memref<128x1xf32, #tpu.memory_space<vmem>>, %arg9: memref<128x1xf32, #tpu.memory_space<vmem>>, %arg10: memref<128x1xf32, #tpu.memory_space<vmem>>, %arg11: memref<128x1xf32, #tpu.memory_space<vmem>>) attributes {dimension_semantics = [#tpu.dimension_semantics<parallel>, #tpu.dimension_semantics<arbitrary>], iteration_bounds = array<i64: 1, 1>, scalar_prefetch = 0 : i64, scratch_operands = 5 : i64, tpu.core_type = #tpu.core_type<tc>, window_params = [{transform_indices = @transform_0, window_bounds = array<i64: 128, 1>}, {transform_indices = @transform_1, window_bounds = array<i64: 1, 128>}, {transform_indices = @transform_2, window_bounds = array<i64: 128, 128>}, {transform_indices = @transform_3, window_bounds = array<i64: 128, 128>}, {transform_indices = @transform_4, window_bounds = array<i64: 128, 1>}]} {
    %c0_i32 = arith.constant 0 : i32
    %0 = arith.cmpi eq, %arg1, %c0_i32 : i32
    %1 = arith.extui %0 : i1 to i32
    %c0_i32_0 = arith.constant 0 : i32
    %2 = arith.cmpi ne, %1, %c0_i32_0 : i32
    scf.if %2 {
      %c0_38 = arith.constant 0 : index
      %c0_39 = arith.constant 0 : index
      %71 = vector.load %arg4[%c0_38, %c0_39] : memref<128x128xf32, #tpu.memory_space<vmem>>, vector<128x128xf32>
      %72 = arith.cmpf one, %71, %71 : vector<128x128xf32>
      %cst_40 = arith.constant 0.000000e+00 : f32
      %73 = vector.broadcast %cst_40 : f32 to vector<128x128xf32>
      %74 = arith.select %72, %73, %71 : vector<128x128xi1>, vector<128x128xf32>
      %75 = arith.mulf %74, %74 : vector<128x128xf32>
      %cst_41 = arith.constant dense<0.000000e+00> : vector<128xf32>
      %76 = vector.multi_reduction <add>, %75, %cst_41 [1] : vector<128x128xf32> to vector<128xf32>
      %77 = vector.shape_cast %76 : vector<128xf32> to vector<128x1xf32>
      %cst_42 = arith.constant 1.000000e-24 : f32
      %78 = vector.broadcast %cst_42 : f32 to vector<128x1xf32>
      %79 = arith.maximumf %77, %78 : vector<128x1xf32>
      %80 = math.rsqrt %79 : vector<128x1xf32>
      %81 = vector.broadcast %80 : vector<128x1xf32> to vector<128x128xf32>
      %82 = arith.mulf %74, %81 : vector<128x128xf32>
      %83 = arith.truncf %82 : vector<128x128xf32> to vector<128x128xbf16>
      %c0_43 = arith.constant 0 : index
      %c0_44 = arith.constant 0 : index
      %84 = vector.load %arg7[%c0_43, %c0_44] : memref<128x128xbf16, #tpu.memory_space<vmem>>, vector<128x128xbf16>
      tpu.vector_store %arg7[%c0_43, %c0_44], %83 {strides = array<i32>} : memref<128x128xbf16, #tpu.memory_space<vmem>>, vector<128x128xbf16>,
      %cst_45 = arith.constant -1.000000e+30 : f32
      %85 = vector.broadcast %cst_45 : f32 to vector<128x1xf32>
      %c0_46 = arith.constant 0 : index
      %c0_47 = arith.constant 0 : index
      %86 = vector.load %arg8[%c0_46, %c0_47] : memref<128x1xf32, #tpu.memory_space<vmem>>, vector<128x1xf32>
      tpu.vector_store %arg8[%c0_46, %c0_47], %85 {strides = array<i32>} : memref<128x1xf32, #tpu.memory_space<vmem>>, vector<128x1xf32>,
      %cst_48 = arith.constant 0.000000e+00 : f32
      %87 = vector.broadcast %cst_48 : f32 to vector<128x1xf32>
      %c0_49 = arith.constant 0 : index
      %c0_50 = arith.constant 0 : index
      %88 = vector.load %arg9[%c0_49, %c0_50] : memref<128x1xf32, #tpu.memory_space<vmem>>, vector<128x1xf32>
      tpu.vector_store %arg9[%c0_49, %c0_50], %87 {strides = array<i32>} : memref<128x1xf32, #tpu.memory_space<vmem>>, vector<128x1xf32>,
      %cst_51 = arith.constant 0.000000e+00 : f32
      %89 = vector.broadcast %cst_51 : f32 to vector<128x1xf32>
      %c0_52 = arith.constant 0 : index
      %c0_53 = arith.constant 0 : index
      %90 = vector.load %arg10[%c0_52, %c0_53] : memref<128x1xf32, #tpu.memory_space<vmem>>, vector<128x1xf32>
      tpu.vector_store %arg10[%c0_52, %c0_53], %89 {strides = array<i32>} : memref<128x1xf32, #tpu.memory_space<vmem>>, vector<128x1xf32>,
      %cst_54 = arith.constant 0.000000e+00 : f32
      %91 = vector.broadcast %cst_54 : f32 to vector<128x1xf32>
      %c0_55 = arith.constant 0 : index
      %c0_56 = arith.constant 0 : index
      %92 = vector.load %arg11[%c0_55, %c0_56] : memref<128x1xf32, #tpu.memory_space<vmem>>, vector<128x1xf32>
      tpu.vector_store %arg11[%c0_55, %c0_56], %91 {strides = array<i32>} : memref<128x1xf32, #tpu.memory_space<vmem>>, vector<128x1xf32>,
    } else {
    }
    %c0 = arith.constant 0 : index
    %c0_1 = arith.constant 0 : index
    %3 = vector.load %arg5[%c0, %c0_1] : memref<128x128xf32, #tpu.memory_space<vmem>>, vector<128x128xf32>
    %4 = arith.cmpf one, %3, %3 : vector<128x128xf32>
    %cst = arith.constant 0.000000e+00 : f32
    %5 = vector.broadcast %cst : f32 to vector<128x128xf32>
    %6 = arith.select %4, %5, %3 : vector<128x128xi1>, vector<128x128xf32>
    %7 = arith.mulf %6, %6 : vector<128x128xf32>
    %cst_2 = arith.constant dense<0.000000e+00> : vector<128xf32>
    %8 = vector.multi_reduction <add>, %7, %cst_2 [1] : vector<128x128xf32> to vector<128xf32>
    %9 = vector.shape_cast %8 : vector<128xf32> to vector<128x1xf32>
    %cst_3 = arith.constant 1.000000e-24 : f32
    %10 = vector.broadcast %cst_3 : f32 to vector<128x1xf32>
    %11 = arith.maximumf %9, %10 : vector<128x1xf32>
    %12 = math.rsqrt %11 : vector<128x1xf32>
    %13 = vector.broadcast %12 : vector<128x1xf32> to vector<128x128xf32>
    %14 = arith.mulf %6, %13 : vector<128x128xf32>
    %15 = arith.truncf %14 : vector<128x128xf32> to vector<128x128xbf16>
    %c0_4 = arith.constant 0 : index
    %c0_5 = arith.constant 0 : index
    %16 = vector.load %arg7[%c0_4, %c0_5] : memref<128x128xbf16, #tpu.memory_space<vmem>>, vector<128x128xbf16>
    %cst_6 = arith.constant dense<0.000000e+00> : vector<128x128xf32>
    %17 = tpu.matmul %16, %15, %cst_6 {dimension_numbers = #tpu.dot_dimension_numbers<[1], [1], [0], [0], [0, 0, 1, 0], [], []>} : vector<128x128xbf16>, vector<128x128xbf16>, vector<128x128xf32> -> vector<128x128xf32>
    %cst_7 = arith.constant 1.42857146 : f32
    %18 = vector.broadcast %cst_7 : f32 to vector<128x128xf32>
    %19 = arith.mulf %17, %18 : vector<128x128xf32>
    %20 = tpu.iota {dimensions = array<i32: 1>} : vector<128x128xi32>
    %c128_i32 = arith.constant 128 : i32
    %21 = arith.muli %arg1, %c128_i32 : i32
    %22 = vector.broadcast %21 : i32 to vector<128x128xi32>
    %23 = arith.addi %20, %22 : vector<128x128xi32>
    %c8_i32 = arith.constant 8 : i32
    %24 = vector.broadcast %c8_i32 : i32 to vector<128x128xi32>
    %25 = arith.cmpi slt, %23, %24 : vector<128x128xi32>
    %c0_8 = arith.constant 0 : index
    %c0_9 = arith.constant 0 : index
    %26 = vector.load %arg2[%c0_8, %c0_9] : memref<128x1xi32, #tpu.memory_space<vmem>>, vector<128x1xi32>
    %c0_10 = arith.constant 0 : index
    %c0_11 = arith.constant 0 : index
    %27 = vector.load %arg3[%c0_10, %c0_11] : memref<1x128xi32, #tpu.memory_space<vmem>>, vector<1x128xi32>
    %28 = vector.broadcast %26 : vector<128x1xi32> to vector<128x128xi32>
    %29 = vector.broadcast %27 : vector<1x128xi32> to vector<128x128xi32>
    %30 = arith.cmpi eq, %28, %29 : vector<128x128xi32>
    %31 = arith.andi %30, %25 : vector<128x128xi1>
    %32 = arith.extui %31 : vector<128x128xi1> to vector<128x128xi32>
    %33 = arith.sitofp %32 : vector<128x128xi32> to vector<128x128xf32>
    %cst_12 = arith.constant -1.000000e+30 : f32
    %34 = vector.broadcast %cst_12 : f32 to vector<128x128xf32>
    %35 = arith.select %25, %19, %34 : vector<128x128xi1>, vector<128x128xf32>
    %c0_13 = arith.constant 0 : index
    %c0_14 = arith.constant 0 : index
    %36 = vector.load %arg8[%c0_13, %c0_14] : memref<128x1xf32, #tpu.memory_space<vmem>>, vector<128x1xf32>
    %cst_15 = arith.constant dense<0xFF800000> : vector<128xf32>
    %37 = vector.multi_reduction <maximumf>, %35, %cst_15 [1] : vector<128x128xf32> to vector<128xf32>
    %38 = vector.shape_cast %37 : vector<128xf32> to vector<128x1xf32>
    %39 = arith.maximumf %36, %38 : vector<128x1xf32>
    %c0_16 = arith.constant 0 : index
    %c0_17 = arith.constant 0 : index
    %40 = vector.load %arg8[%c0_16, %c0_17] : memref<128x1xf32, #tpu.memory_space<vmem>>, vector<128x1xf32>
    %41 = arith.subf %40, %39 : vector<128x1xf32>
    %42 = math.exp %41 : vector<128x1xf32>
    %43 = vector.broadcast %39 : vector<128x1xf32> to vector<128x128xf32>
    %44 = arith.subf %35, %43 : vector<128x128xf32>
    %45 = math.exp %44 : vector<128x128xf32>
    %c0_18 = arith.constant 0 : index
    %c0_19 = arith.constant 0 : index
    %46 = vector.load %arg9[%c0_18, %c0_19] : memref<128x1xf32, #tpu.memory_space<vmem>>, vector<128x1xf32>
    %47 = arith.mulf %42, %46 : vector<128x1xf32>
    %cst_20 = arith.constant dense<0.000000e+00> : vector<128xf32>
    %48 = vector.multi_reduction <add>, %45, %cst_20 [1] : vector<128x128xf32> to vector<128xf32>
    %49 = vector.shape_cast %48 : vector<128xf32> to vector<128x1xf32>
    %50 = arith.mulf %45, %33 : vector<128x128xf32>
    %cst_21 = arith.constant dense<0.000000e+00> : vector<128xf32>
    %51 = vector.multi_reduction <add>, %50, %cst_21 [1] : vector<128x128xf32> to vector<128xf32>
    %52 = vector.shape_cast %51 : vector<128xf32> to vector<128x1xf32>
    %53 = arith.subf %49, %52 : vector<128x1xf32>
    %54 = arith.addf %47, %53 : vector<128x1xf32>
    %c0_22 = arith.constant 0 : index
    %c0_23 = arith.constant 0 : index
    %55 = vector.load %arg9[%c0_22, %c0_23] : memref<128x1xf32, #tpu.memory_space<vmem>>, vector<128x1xf32>
    tpu.vector_store %arg9[%c0_22, %c0_23], %54 {strides = array<i32>} : memref<128x1xf32, #tpu.memory_space<vmem>>, vector<128x1xf32>,
    %c0_24 = arith.constant 0 : index
    %c0_25 = arith.constant 0 : index
    %56 = vector.load %arg10[%c0_24, %c0_25] : memref<128x1xf32, #tpu.memory_space<vmem>>, vector<128x1xf32>
    %57 = arith.mulf %19, %33 : vector<128x128xf32>
    %cst_26 = arith.constant dense<0.000000e+00> : vector<128xf32>
    %58 = vector.multi_reduction <add>, %57, %cst_26 [1] : vector<128x128xf32> to vector<128xf32>
    %59 = vector.shape_cast %58 : vector<128xf32> to vector<128x1xf32>
    %60 = arith.addf %56, %59 : vector<128x1xf32>
    %c0_27 = arith.constant 0 : index
    %c0_28 = arith.constant 0 : index
    %61 = vector.load %arg10[%c0_27, %c0_28] : memref<128x1xf32, #tpu.memory_space<vmem>>, vector<128x1xf32>
    tpu.vector_store %arg10[%c0_27, %c0_28], %60 {strides = array<i32>} : memref<128x1xf32, #tpu.memory_space<vmem>>, vector<128x1xf32>,
    %c0_29 = arith.constant 0 : index
    %c0_30 = arith.constant 0 : index
    %62 = vector.load %arg11[%c0_29, %c0_30] : memref<128x1xf32, #tpu.memory_space<vmem>>, vector<128x1xf32>
    %cst_31 = arith.constant dense<0.000000e+00> : vector<128xf32>
    %63 = vector.multi_reduction <add>, %33, %cst_31 [1] : vector<128x128xf32> to vector<128xf32>
    %64 = vector.shape_cast %63 : vector<128xf32> to vector<128x1xf32>
    %65 = arith.addf %62, %64 : vector<128x1xf32>
    %c0_32 = arith.constant 0 : index
    %c0_33 = arith.constant 0 : index
    %66 = vector.load %arg11[%c0_32, %c0_33] : memref<128x1xf32, #tpu.memory_space<vmem>>, vector<128x1xf32>
    tpu.vector_store %arg11[%c0_32, %c0_33], %65 {strides = array<i32>} : memref<128x1xf32, #tpu.memory_space<vmem>>, vector<128x1xf32>,
    %c0_34 = arith.constant 0 : index
    %c0_35 = arith.constant 0 : index
    %67 = vector.load %arg8[%c0_34, %c0_35] : memref<128x1xf32, #tpu.memory_space<vmem>>, vector<128x1xf32>
    tpu.vector_store %arg8[%c0_34, %c0_35], %39 {strides = array<i32>} : memref<128x1xf32, #tpu.memory_space<vmem>>, vector<128x1xf32>,
    %c0_i32_36 = arith.constant 0 : i32
    %68 = arith.cmpi eq, %arg1, %c0_i32_36 : i32
    %69 = arith.extui %68 : i1 to i32
    %c0_i32_37 = arith.constant 0 : i32
    %70 = arith.cmpi ne, %69, %c0_i32_37 : i32
    scf.if %70 {
      %c0_38 = arith.constant 0 : index
      %c0_39 = arith.constant 0 : index
      %71 = vector.load %arg11[%c0_38, %c0_39] : memref<128x1xf32, #tpu.memory_space<vmem>>, vector<128x1xf32>
      %c0_40 = arith.constant 0 : index
      %c0_41 = arith.constant 0 : index
      %72 = vector.load %arg8[%c0_40, %c0_41] : memref<128x1xf32, #tpu.memory_space<vmem>>, vector<128x1xf32>
      %c0_42 = arith.constant 0 : index
      %c0_43 = arith.constant 0 : index
      %73 = vector.load %arg9[%c0_42, %c0_43] : memref<128x1xf32, #tpu.memory_space<vmem>>, vector<128x1xf32>
      %74 = math.log %73 : vector<128x1xf32>
      %75 = arith.addf %72, %74 : vector<128x1xf32>
      %c0_44 = arith.constant 0 : index
      %c0_45 = arith.constant 0 : index
      %76 = vector.load %arg10[%c0_44, %c0_45] : memref<128x1xf32, #tpu.memory_space<vmem>>, vector<128x1xf32>
      %77 = arith.mulf %71, %75 : vector<128x1xf32>
      %78 = arith.subf %76, %77 : vector<128x1xf32>
      %cst_46 = arith.constant 0.000000e+00 : f32
      %79 = vector.broadcast %cst_46 : f32 to vector<128x1xf32>
      %80 = arith.cmpf ogt, %71, %79 : vector<128x1xf32>
      %cst_47 = arith.constant 1.000000e+00 : f32
      %81 = vector.broadcast %cst_47 : f32 to vector<128x1xf32>
      %82 = arith.select %80, %71, %81 : vector<128x1xi1>, vector<128x1xf32>
      %cst_48 = arith.constant 0.000000e+00 : f32
      %83 = vector.broadcast %cst_48 : f32 to vector<128x1xf32>
      %84 = arith.cmpf ogt, %71, %83 : vector<128x1xf32>
      %85 = arith.divf %78, %82 : vector<128x1xf32>
      %cst_49 = arith.constant 0.000000e+00 : f32
      %86 = vector.broadcast %cst_49 : f32 to vector<128x1xf32>
      %87 = arith.select %84, %85, %86 : vector<128x1xi1>, vector<128x1xf32>
      %cst_50 = arith.constant 0.000000e+00 : f32
      %88 = vector.broadcast %cst_50 : f32 to vector<128x1xf32>
      %89 = arith.subf %88, %87 : vector<128x1xf32>
      %cst_51 = arith.constant 0.699999988 : f32
      %90 = vector.broadcast %cst_51 : f32 to vector<128x1xf32>
      %91 = arith.mulf %89, %90 : vector<128x1xf32>
      %c0_52 = arith.constant 0 : index
      %c0_53 = arith.constant 0 : index
      %92 = vector.load %arg6[%c0_52, %c0_53] : memref<128x1xf32, #tpu.memory_space<vmem>>, vector<128x1xf32>
      tpu.vector_store %arg6[%c0_52, %c0_53], %91 {strides = array<i32>} : memref<128x1xf32, #tpu.memory_space<vmem>>, vector<128x1xf32>,
    } else {
    }
    return
  }
  func.func @transform_0(%arg0: i32, %arg1: i32) -> (i32, i32) {
    %c0_i32 = arith.constant 0 : i32
    %c0_i32_0 = arith.constant 0 : i32
    return %arg0, %c0_i32 : i32, i32
  }
  func.func @transform_1(%arg0: i32, %arg1: i32) -> (i32, i32) {
    %c0_i32 = arith.constant 0 : i32
    %c0_i32_0 = arith.constant 0 : i32
    return %c0_i32, %arg1 : i32, i32
  }
  func.func @transform_2(%arg0: i32, %arg1: i32) -> (i32, i32) {
    %c0_i32 = arith.constant 0 : i32
    %c0_i32_0 = arith.constant 0 : i32
    return %arg0, %c0_i32 : i32, i32
  }
  func.func @transform_3(%arg0: i32, %arg1: i32) -> (i32, i32) {
    %c0_i32 = arith.constant 0 : i32
    %c0_i32_0 = arith.constant 0 : i32
    return %arg1, %c0_i32 : i32, i32
  }
  func.func @transform_4(%arg0: i32, %arg1: i32) -> (i32, i32) {
    %c0_i32 = arith.constant 0 : i32
    %c0_i32_0 = arith.constant 0 : i32
    return %arg0, %c0_i32 : i32, i32
  }
}

</mosaic_0001>

<bundles_post_ra>
// kernel: tpu_custom_call.1
= control target key start
LH: loop header
LB: loop body
LE: loop exit
PB: predicated region body
PF: predicated region fallthrough
CT: control target
= control target key end

     0   :  { %9 = vsyncpa [#allocation8], 0  ;;  %s1867_s15 = smov [#allocation7]   ;;  %s3114_s0 = inlined_call_operand.vmem [shape: s32[128,1], index: 0, kind: input, shape index: {}]   ;;  %s3115_s1 = inlined_call_operand.vmem [shape: s32[1,128], index: 1, kind: input, shape index: {}]   ;;  %s3116_s2 = inlined_call_operand.vmem [shape: f32[128,128], index: 2, kind: input, shape index: {}]   ;;  %s3117_s3 = inlined_call_operand.hbm [shape: f32[128,128], index: 3, kind: input, shape index: {}]   ;;  %s3118_s4 = inlined_call_operand.vmem [shape: f32[128,1], index: 4, kind: output, shape index: {}]  }
   0x1   :  { %s21_s16 = sshll.u32 %s1867_s15, 4  ;;  %s1843_s19 = scalar_lea.hbm %s3117_s3, 2048  ;;  %s22_s16 = int_to_ptr.vmem [resolvable:$true] %s21_s16 }
   0x2   :  { %p1844_p0 = scmp.ne.s32.totalorder %s3117_s3, %s1843_s19  ;;  %p1847_p1 = scmp.lt.u32.totalorder %s1843_s19, %s3117_s3 }
   0x4   :  { %p1849_p2 = pnand %p1847_p1, %p1844_p0 }
   0x6   :  { %1852 = shalt.err (!%p1849_p2)
}
   0x7   :  { %s1853_s24 = scalar_lea.vmem %s22_s16, 2048  ;;  %p1858_p4 = scmp.lt.s32.totalorder %s22_s16, %s22_s16 }
   0x8   :  { %p1854_p3 = scmp.ne.s32.totalorder %s22_s16, %s1853_s24  ;;  %p1859_p5 = scmp.lt.s32.totalorder %s1853_s24, %s1853_s24 }
   0xa   :  { %p1860_p6 = por %p1859_p5, %p1858_p4 }
   0xc   :  { %p1861_p7 = pnand %p1860_p6, %p1854_p3 }
   0xe   :  { %1864 = shalt.err (!%p1861_p7)
}
   0xf   :  { %s1868_s25 = smov 128   ;;  %s1869_s26 = smov 8  }
  0x10   :  { %27 = dma.hbm_to_vmem [thread:$0]  %s3117_s3, 2048, %s22_s16, [#allocation8], %s1868_s25, %s1868_s25, %s1869_s26  }
  0x11   :  { %1865 = dma.done.wait [#allocation8], 2048  }
  0x12   :  { %1866 = vsyncadd [#allocation8], 4294965248  ;;  %v261_v0 = vld [vmem:[#allocation7] sm:$0xff]  ;;  %v263_v1 = vld [vmem:[#allocation7 + $0x10] sm:$0xff] }
  0x13   :  { %v262_v2 = vld [vmem:[#allocation7 + $0x8] sm:$0xff]  ;;  %vm277_vm0 = vcmp.ne.f32.partialorder %v261_v0, %v261_v0  ;;  %vm279_vm1 = vcmp.ne.f32.partialorder %v263_v1, %v263_v1  ;;  %v264_v3 = vld [vmem:[#allocation7 + $0x18] sm:$0xff]  ;;  %v265_v5 = vld [vmem:[#allocation7 + $0x20] sm:$0xff] }
  0x14   :  { %vm278_vm2 = vcmp.ne.f32.partialorder %v262_v2, %v262_v2  ;;  %v266_v4 = vld [vmem:[#allocation7 + $0x28] sm:$0xff]  ;;  %v1910_v6 = vsel %vm277_vm0, 0.0, %v261_v0  ;;  %v1912_v7 = vsel %vm279_vm1, 0.0, %v263_v1  ;;  %vm280_vm3 = vcmp.ne.f32.partialorder %v264_v3, %v264_v3  ;;  %v268_v12 = vld [vmem:[#allocation7 + $0x38] sm:$0xff]  ;;  %v267_v13 = vld [vmem:[#allocation7 + $0x30] sm:$0xff] }
  0x15   :  { %v1914_v8 = vsel %vm278_vm2, 0.0, %v262_v2  ;;  %v309_v9 = vmul.f32 %v1910_v6, %v1910_v6  ;;  %v311_v10 = vmul.f32 %v1912_v7, %v1912_v7  ;;  %v1920_v11 = vsel %vm280_vm3, 0.0, %v264_v3  ;;  %v270_v18 = vld [vmem:[#allocation7 + $0x48] sm:$0xff]  ;;  %v269_v19 = vld [vmem:[#allocation7 + $0x40] sm:$0xff]  ;;  %v272_v24 = vld [vmem:[#allocation7 + $0x58] sm:$0xff] }
  0x16   :  { %vm282_vm4 = vcmp.ne.f32.partialorder %v266_v4, %v266_v4  ;;  %vm281_vm5 = vcmp.ne.f32.partialorder %v265_v5, %v265_v5  ;;  %v310_v14 = vmul.f32 %v1914_v8, %v1914_v8  ;;  %v312_v15 = vmul.f32 %v1920_v11, %v1920_v11  ;;  %v271_v25 = vld [vmem:[#allocation7 + $0x50] sm:$0xff]  ;;  %v274_v30 = vld [vmem:[#allocation7 + $0x68] sm:$0xff]  ;;  %v273_v31 = vld [vmem:[#allocation7 + $0x60] sm:$0xff] }
  0x17   :  { %325 = vadd.xlane.f32.xlu0 %v309_v9  ;;  %329 = vadd.xlane.f32.xlu1 %v311_v10  ;;  %v1926_v16 = vsel %vm282_vm4, 0.0, %v266_v4  ;;  %v1928_v17 = vsel %vm281_vm5, 0.0, %v265_v5  ;;  %vm284_vm6 = vcmp.ne.f32.partialorder %v268_v12, %v268_v12  ;;  %vm283_vm7 = vcmp.ne.f32.partialorder %v267_v13, %v267_v13  ;;  %v276_v36 = vld [vmem:[#allocation7 + $0x78] sm:$0xff]  ;;  %v275_v37 = vld [vmem:[#allocation7 + $0x70] sm:$0xff]  ;;  %v37_v42 = vld [vmem:[%s3116_s2 + $0x8] sm:$0xff] }
  0x18   :  { %v314_v20 = vmul.f32 %v1926_v16, %v1926_v16  ;;  %v313_v21 = vmul.f32 %v1928_v17, %v1928_v17  ;;  %v1934_v22 = vsel %vm284_vm6, 0.0, %v268_v12  ;;  %v1936_v23 = vsel %vm283_vm7, 0.0, %v267_v13  ;;  %v36_v43 = vld [vmem:[%s3116_s2] sm:$0xff]  ;;  %v45_v48 = vld [vmem:[%s3116_s2 + $0x48] sm:$0xff]  ;;  %v39_v54 = vld [vmem:[%s3116_s2 + $0x18] sm:$0xff] }
  0x19   :  { %vm286_vm8 = vcmp.ne.f32.partialorder %v270_v18, %v270_v18  ;;  %vm285_vm9 = vcmp.ne.f32.partialorder %v269_v19, %v269_v19  ;;  %v316_v26 = vmul.f32 %v1934_v22, %v1934_v22  ;;  %v315_v27 = vmul.f32 %v1936_v23, %v1936_v23  ;;  %v44_v49 = vld [vmem:[%s3116_s2 + $0x40] sm:$0xff]  ;;  %v38_v55 = vld [vmem:[%s3116_s2 + $0x10] sm:$0xff]  ;;  %v47_v60 = vld [vmem:[%s3116_s2 + $0x58] sm:$0xff] }
  0x1a   :  { %v1942_v28 = vsel %vm286_vm8, 0.0, %v270_v18  ;;  %v1944_v29 = vsel %vm285_vm9, 0.0, %v269_v19  ;;  %vm288_vm10 = vcmp.ne.f32.partialorder %v272_v24, %v272_v24  ;;  %vm287_vm11 = vcmp.ne.f32.partialorder %v271_v25, %v271_v25  ;;  %v46_v61 = vld [vmem:[%s3116_s2 + $0x50] sm:$0xff]  ;;  %v41_v2 = vld [vmem:[%s3116_s2 + $0x28] sm:$0xff]  ;;  %v40_v3 = vld [vmem:[%s3116_s2 + $0x20] sm:$0xff] }
  0x1b   :  { %327 = vadd.xlane.f32.xlu0 %v310_v14  ;;  %331 = vadd.xlane.f32.xlu1 %v312_v15  ;;  %v318_v32 = vmul.f32 %v1942_v28, %v1942_v28  ;;  %v317_v33 = vmul.f32 %v1944_v29, %v1944_v29  ;;  %v1950_v34 = vsel %vm288_vm10, 0.0, %v272_v24  ;;  %v1952_v35 = vsel %vm287_vm11, 0.0, %v271_v25  ;;  %v49_v12 = vld [vmem:[%s3116_s2 + $0x68] sm:$0xff]  ;;  %v48_v13 = vld [vmem:[%s3116_s2 + $0x60] sm:$0xff] }
  0x1c   :  { %vm290_vm12 = vcmp.ne.f32.partialorder %v274_v30, %v274_v30  ;;  %vm289_vm13 = vcmp.ne.f32.partialorder %v273_v31, %v273_v31  ;;  %v320_v38 = vmul.f32 %v1950_v34, %v1950_v34  ;;  %v319_v39 = vmul.f32 %v1952_v35, %v1952_v35 }
  0x1d   :  { %v1958_v40 = vsel %vm290_vm12, 0.0, %v274_v30  ;;  %v1960_v41 = vsel %vm289_vm13, 0.0, %v273_v31  ;;  %vm292_vm14 = vcmp.ne.f32.partialorder %v276_v36, %v276_v36  ;;  %vm291_vm15 = vcmp.ne.f32.partialorder %v275_v37, %v275_v37  ;;  %v51_v30 = vld [vmem:[%s3116_s2 + $0x78] sm:$0xff]  ;;  %v50_v31 = vld [vmem:[%s3116_s2 + $0x70] sm:$0xff] }
  0x1e   :  { %v322_v44 = vmul.f32 %v1958_v40, %v1958_v40  ;;  %v321_v45 = vmul.f32 %v1960_v41, %v1960_v41  ;;  %v1972_v46 = vsel %vm292_vm14, 0.0, %v276_v36  ;;  %v1974_v47 = vsel %vm291_vm15, 0.0, %v275_v37 }
  0x1f   :  { %335 = vadd.xlane.f32.xlu1 %v314_v20  ;;  %333 = vadd.xlane.f32.xlu0 %v313_v21  ;;  %vm53_vm0 = vcmp.ne.f32.partialorder %v37_v42, %v37_v42  ;;  %vm52_vm1 = vcmp.ne.f32.partialorder %v36_v43, %v36_v43  ;;  %v324_v50 = vmul.f32 %v1972_v46, %v1972_v46  ;;  %v43_v20 = vld [vmem:[%s3116_s2 + $0x38] sm:$0xff]  ;;  %v42_v21 = vld [vmem:[%s3116_s2 + $0x30] sm:$0xff] }
  0x20   :  { %v323_v51 = vmul.f32 %v1974_v47, %v1974_v47  ;;  %v1986_v52 = vsel %vm53_vm0, 0.0, %v37_v42  ;;  %v1988_v53 = vsel %vm52_vm1, 0.0, %v36_v43  ;;  %vm61_vm2 = vcmp.ne.f32.partialorder %v45_v48, %v45_v48 }
  0x21   :  { %vm60_vm3 = vcmp.ne.f32.partialorder %v44_v49, %v44_v49  ;;  %v85_v56 = vmul.f32 %v1986_v52, %v1986_v52  ;;  %v84_v57 = vmul.f32 %v1988_v53, %v1988_v53  ;;  %v2000_v58 = vsel %vm61_vm2, 0.0, %v45_v48  ;;  %v541_v48 = vld [vmem:[%s3114_s0 + $0x8] sm:$0xff] }
  0x22   :  { %v2002_v59 = vsel %vm60_vm3, 0.0, %v44_v49  ;;  %vm55_vm4 = vcmp.ne.f32.partialorder %v39_v54, %v39_v54  ;;  %vm54_vm5 = vcmp.ne.f32.partialorder %v38_v55, %v38_v55  ;;  %v93_v62 = vmul.f32 %v2000_v58, %v2000_v58 }
  0x23   :  { %339 = vadd.xlane.f32.xlu1 %v316_v26  ;;  %337 = vadd.xlane.f32.xlu0 %v315_v27  ;;  %v92_v63 = vmul.f32 %v2002_v59, %v2002_v59  ;;  %v2014_v0 = vsel %vm55_vm4, 0.0, %v39_v54  ;;  %v2016_v1 = vsel %vm54_vm5, 0.0, %v38_v55  ;;  %vm63_vm6 = vcmp.ne.f32.partialorder %v47_v60, %v47_v60  ;;  %v544_v54 = vld [vmem:[%s3114_s0 + $0x20] sm:$0xff] }
  0x24   :  { %vm62_vm7 = vcmp.ne.f32.partialorder %v46_v61, %v46_v61  ;;  %v87_v4 = vmul.f32 %v2014_v0, %v2014_v0  ;;  %v86_v5 = vmul.f32 %v2016_v1, %v2016_v1  ;;  %v2028_v9 = vsel %vm63_vm6, 0.0, %v47_v60  ;;  %v540_v55 = vld [vmem:[%s3114_s0] sm:$0xff]  ;;  %v546_v60 = vld [vmem:[%s3114_s0 + $0x30] sm:$0xff] }
  0x25   :  { %v2030_v10 = vsel %vm62_vm7, 0.0, %v46_v61  ;;  %vm57_vm8 = vcmp.ne.f32.partialorder %v41_v2, %v41_v2  ;;  %vm56_vm9 = vcmp.ne.f32.partialorder %v40_v3, %v40_v3  ;;  %v95_v14 = vmul.f32 %v2028_v9, %v2028_v9  ;;  %v551_v61 = vld [vmem:[%s3114_s0 + $0x58] sm:$0xff] }
  0x26   :  { %v94_v15 = vmul.f32 %v2030_v10, %v2030_v10  ;;  %v2042_v18 = vsel %vm57_vm8, 0.0, %v41_v2  ;;  %v2044_v19 = vsel %vm56_vm9, 0.0, %v40_v3  ;;  %vm65_vm10 = vcmp.ne.f32.partialorder %v49_v12, %v49_v12  ;;  %v548_v2 = vld [vmem:[%s3114_s0 + $0x40] sm:$0xff]  ;;  %v555_v3 = vld [vmem:[%s3114_s0 + $0x78] sm:$0xff] }
  0x27   :  { %343 = vadd.xlane.f32.xlu1 %v318_v32  ;;  %341 = vadd.xlane.f32.xlu0 %v317_v33  ;;  %vm64_vm11 = vcmp.ne.f32.partialorder %v48_v13, %v48_v13  ;;  %v89_v24 = vmul.f32 %v2042_v18, %v2042_v18  ;;  %v88_v25 = vmul.f32 %v2044_v19, %v2044_v19  ;;  %v2056_v26 = vsel %vm65_vm10, 0.0, %v49_v12  ;;  %v554_v12 = vld [vmem:[%s3114_s0 + $0x70] sm:$0xff] }
  0x28   :  { %v2058_v27 = vsel %vm64_vm11, 0.0, %v48_v13  ;;  %vm59_vm12 = vcmp.ne.f32.partialorder %v43_v20, %v43_v20  ;;  %vm58_vm13 = vcmp.ne.f32.partialorder %v42_v21, %v42_v21  ;;  %v97_v32 = vmul.f32 %v2056_v26, %v2056_v26 }
  0x29   :  { %v96_v33 = vmul.f32 %v2058_v27, %v2058_v27  ;;  %v2070_v36 = vsel %vm59_vm12, 0.0, %v43_v20  ;;  %v2072_v37 = vsel %vm58_vm13, 0.0, %v42_v21  ;;  %vm67_vm14 = vcmp.ne.f32.partialorder %v51_v30, %v51_v30 }
  0x2a   :  { %vm66_vm15 = vcmp.ne.f32.partialorder %v50_v31, %v50_v31  ;;  %v2078_v42 = vsel %vm67_vm14, 0.0, %v51_v30  ;;  %v1870_v49 = vmov 0  }
  0x2b   :  { %347 = vadd.xlane.f32.xlu1 %v320_v38  ;;  %345 = vadd.xlane.f32.xlu0 %v319_v39  ;;  %v91_v38 = vmul.f32 %v2070_v36, %v2070_v36  ;;  %v90_v39 = vmul.f32 %v2072_v37, %v2072_v37  ;;  %v2080_v43 = vsel %vm66_vm15, 0.0, %v50_v31 }
  0x2c   :  { %1650 = vset.pattern.permute.xlu1 %v1870_v49  ;;  %1649 = vset.pattern.permute.xlu0 %v1870_v49 }
  0x2f   :  { %351 = vadd.xlane.f32.xlu1 %v322_v44  ;;  %349 = vadd.xlane.f32.xlu0 %v321_v45  ;;  %v99_v44 = vmul.f32 %v2078_v42, %v2078_v42  ;;  %v98_v45 = vmul.f32 %v2080_v43, %v2080_v43 }
  0x33   :  { %355 = vadd.xlane.f32.xlu1 %v324_v50  ;;  %353 = vadd.xlane.f32.xlu0 %v323_v51  ;;  %v542_v50 = vld [vmem:[%s3114_s0 + $0x10] sm:$0xff]  ;;  %v543_v51 = vld [vmem:[%s3114_s0 + $0x18] sm:$0xff] }
  0x37   :  { %102 = vadd.xlane.f32.xlu1 %v85_v56  ;;  %100 = vadd.xlane.f32.xlu0 %v84_v57  ;;  %v545_v56 = vld [vmem:[%s3114_s0 + $0x28] sm:$0xff] }
  0x38   :  { %v549_v57 = vld [vmem:[%s3114_s0 + $0x48] sm:$0xff] }
  0x3b   :  { %118 = vadd.xlane.f32.xlu1 %v93_v62  ;;  %116 = vadd.xlane.f32.xlu0 %v92_v63  ;;  %v547_v62 = vld [vmem:[%s3114_s0 + $0x38] sm:$0xff]  ;;  %v553_v63 = vld [vmem:[%s3114_s0 + $0x68] sm:$0xff] }
  0x3f   :  { %106 = vadd.xlane.f32.xlu1 %v87_v4  ;;  %104 = vadd.xlane.f32.xlu0 %v86_v5  ;;  %v550_v4 = vld [vmem:[%s3114_s0 + $0x50] sm:$0xff]  ;;  %v552_v5 = vld [vmem:[%s3114_s0 + $0x60] sm:$0xff] }
  0x43   :  { %122 = vadd.xlane.f32.xlu1 %v95_v14  ;;  %120 = vadd.xlane.f32.xlu0 %v94_v15 }
  0x47   :  { %110 = vadd.xlane.f32.xlu1 %v89_v24  ;;  %108 = vadd.xlane.f32.xlu0 %v88_v25 }
  0x4b   :  { %126 = vadd.xlane.f32.xlu1 %v97_v32  ;;  %124 = vadd.xlane.f32.xlu0 %v96_v33 }
  0x4f   :  { %114 = vadd.xlane.f32.xlu1 %v91_v38  ;;  %112 = vadd.xlane.f32.xlu0 %v90_v39 }
  0x53   :  { %130 = vadd.xlane.f32.xlu1 %v99_v44  ;;  %128 = vadd.xlane.f32.xlu0 %v98_v45 }
  0x64   :  { %561 = vperm.xlu1 %1650, %v541_v48  }
  0x68   :  { %564 = vperm.xlu1 %1650, %v542_v50  }
  0x69   :  { %558 = vperm.xlu0 %1649, %v540_v55  }
  0x6c   :  { %567 = vperm.xlu1 %1650, %v543_v51  }
  0x6d   :  { %585 = vperm.xlu0 %1649, %v549_v57  }
  0x70   :  { %570 = vperm.xlu1 %1650, %v544_v54  }
  0x71   :  { %591 = vperm.xlu0 %1649, %v551_v61  }
  0x74   :  { %573 = vperm.xlu1 %1650, %v545_v56  }
  0x75   :  { %597 = vperm.xlu0 %1649, %v553_v63  }
  0x78   :  { %576 = vperm.xlu1 %1650, %v546_v60  }
  0x79   :  { %603 = vperm.xlu0 %1649, %v555_v3  }
  0x7c   :  { %579 = vperm.xlu1 %1650, %v547_v62  }
  0x80   :  { %582 = vperm.xlu1 %1650, %v548_v2  }
  0x84   :  { %588 = vperm.xlu1 %1650, %v550_v4  }
  0x88   :  { %594 = vperm.xlu1 %1650, %v552_v5  }
  0x8c   :  { %600 = vperm.xlu1 %1650, %v554_v12  }
  0xa4   :  { %v326_v13 = vpop.xlane.xlu0 %325  ;;  %v330_v14 = vpop.xlane.xlu1 %329 }
  0xa5   :  { %v357_v15 = vmax.f32 %v326_v13, 1e-24  ;;  %v359_v20 = vmax.f32 %v330_v14, 1e-24 }
  0xa7   :  { %1651 = vrsqrt.f32 %v359_v20 }
  0xa8   :  { %v328_v21 = vpop.xlane.xlu0 %327  ;;  %v332_v24 = vpop.xlane.xlu1 %331  ;;  %1653 = vrsqrt.f32 %v357_v15 }
  0xa9   :  { %v358_v25 = vmax.f32 %v328_v21, 1e-24  ;;  %v360_v30 = vmax.f32 %v332_v24, 1e-24 }
  0xab   :  { %1655 = vrsqrt.f32 %v358_v25 }
  0xac   :  { %1657 = vrsqrt.f32 %v360_v30  ;;  %v336_v31 = vpop.xlane.xlu1 %335  ;;  %v334_v32 = vpop.xlane.xlu0 %333 }
  0xad   :  { %v362_v33 = vmax.f32 %v336_v31, 1e-24  ;;  %v361_v38 = vmax.f32 %v334_v32, 1e-24 }
  0xaf   :  { %1659 = vrsqrt.f32 %v362_v33 }
  0xb0   :  { %1661 = vrsqrt.f32 %v361_v38  ;;  %v340_v39 = vpop.xlane.xlu1 %339  ;;  %v338_v44 = vpop.xlane.xlu0 %337 }
  0xb1   :  { %v1652_v45 = vpop.eup %1651  ;;  %v364_v48 = vmax.f32 %v340_v39, 1e-24  ;;  %v363_v50 = vmax.f32 %v338_v44, 1e-24 }
  0xb2   :  { %v1654_v49 = vpop.eup %1653  ;;  %v391_v56 = vmul.f32 %v1652_v45, %v1912_v7 }
  0xb3   :  { %v389_v60 = vmul.f32 %v1654_v49, %v1910_v6  ;;  %1663 = vrsqrt.f32 %v364_v48 }
  0xb4   :  { %v344_v51 = vpop.xlane.xlu1 %343  ;;  %v342_v54 = vpop.xlane.xlu0 %341  ;;  %1665 = vrsqrt.f32 %v363_v50 }
  0xb5   :  { %v1656_v55 = vpop.eup %1655  ;;  %v366_v13 = vmax.f32 %v344_v51, 1e-24  ;;  %v365_v7 = vmax.f32 %v342_v54, 1e-24 }
  0xb6   :  { %v1658_v57 = vpop.eup %1657  ;;  %v390_v61 = vmul.f32 %v1656_v55, %v1914_v8 }
  0xb7   :  { %v392_v62 = vmul.f32 %v1658_v57, %v1920_v11  ;;  %1667 = vrsqrt.f32 %v366_v13 }
  0xb8   :  { %v405_v63 = vpack.c.bf16 %v390_v61, %v389_v60  ;;  %v348_v2 = vpop.xlane.xlu1 %347  ;;  %v346_v3 = vpop.xlane.xlu0 %345  ;;  %1669 = vrsqrt.f32 %v365_v7 }
  0xb9   :  { %v1660_v4 = vpop.eup %1659  ;;  %v406_v5 = vpack.c.bf16 %v392_v62, %v391_v56  ;;  %v368_v30 = vmax.f32 %v348_v2, 1e-24  ;;  %v367_v31 = vmax.f32 %v346_v3, 1e-24 }
  0xba   :  { %v1662_v12 = vpop.eup %1661  ;;  %1595 = vmatprep.subr.bf16.mxu0 %v405_v63  ;;  %1627 = vmatprep.subr.bf16.mxu1 %v405_v63  ;;  %v394_v8 = vmul.f32 %v1660_v4, %v1926_v16 }
  0xbb   :  { %1596 = vmatpush3.bf16.xpose.msra.mxu0 %v405_v63  ;;  %1635 = vmatpush3.bf16.xpose.msra.mxu1 %v405_v63  ;;  %v393_v6 = vmul.f32 %v1662_v12, %v1928_v17  ;;  %1671 = vrsqrt.f32 %v368_v30 }
  0xbc   :  { %1597 = vmatprep.subr.bf16.mxu0 %v406_v5  ;;  %1628 = vmatprep.subr.bf16.mxu1 %v406_v5  ;;  %v352_v11 = vpop.xlane.xlu1 %351  ;;  %v350_v14 = vpop.xlane.xlu0 %349  ;;  %1673 = vrsqrt.f32 %v367_v31 }
  0xbd   :  { %v1664_v15 = vpop.eup %1663  ;;  %v407_v20 = vpack.c.bf16 %v394_v8, %v393_v6  ;;  %v370_v55 = vmax.f32 %v352_v11, 1e-24 }
  0xbe   :  { %v1666_v25 = vpop.eup %1665  ;;  %v396_v16 = vmul.f32 %v1664_v15, %v1934_v22 }
  0xbf   :  { %v395_v17 = vmul.f32 %v1666_v25, %v1936_v23  ;;  %v369_v23 = vmax.f32 %v350_v14, 1e-24 }
  0xc0   :  { %v356_v21 = vpop.xlane.xlu1 %355  ;;  %v2140_v24 = vpop.xlane.xlu0 %353 }
  0xc1   :  { %v1668_v44 = vpop.eup %1667  ;;  %v408_v45 = vpack.c.bf16 %v396_v16, %v395_v17  ;;  %v372_v12 = vmax.f32 %v356_v21, 1e-24  ;;  %v371_v7 = vmax.f32 %v2140_v24, 1e-24 }
  0xc2   :  { %v1670_v50 = vpop.eup %1669  ;;  %v398_v56 = vmul.f32 %v1668_v44, %v1942_v28 }
  0xc3   :  { %1598 = vmatpush3.bf16.xpose.msra.mxu0 %v406_v5  ;;  %1636 = vmatpush3.bf16.xpose.msra.mxu1 %v406_v5  ;;  %v397_v22 = vmul.f32 %v1670_v50, %v1944_v29 }
  0xc4   :  { %1599 = vmatprep.subr.bf16.mxu0 %v407_v20  ;;  %1629 = vmatprep.subr.bf16.mxu1 %v407_v20  ;;  %v103_v32 = vpop.xlane.xlu1 %102  ;;  %v101_v33 = vpop.xlane.xlu0 %100 }
  0xc5   :  { %v133_v38 = vmax.f32 %v103_v32, 1e-24  ;;  %v132_v39 = vmax.f32 %v101_v33, 1e-24  ;;  %v1672_v61 = vpop.eup %1671  ;;  %v409_v63 = vpack.c.bf16 %v398_v56, %v397_v22 }
  0xc6   :  { %v1674_v62 = vpop.eup %1673  ;;  %v400_v6 = vmul.f32 %v1672_v61, %v1950_v34 }
  0xc7   :  { %1675 = vrsqrt.f32 %v133_v38  ;;  %v399_v29 = vmul.f32 %v1674_v62, %v1952_v35 }
  0xc8   :  { %1677 = vrsqrt.f32 %v132_v39  ;;  %v119_v48 = vpop.xlane.xlu1 %118  ;;  %v117_v49 = vpop.xlane.xlu0 %116 }
  0xc9   :  { %v141_v51 = vmax.f32 %v119_v48, 1e-24  ;;  %v140_v54 = vmax.f32 %v117_v49, 1e-24 }
  0xcb   :  { %1600 = vmatpush3.bf16.xpose.msra.mxu0 %v407_v20  ;;  %1637 = vmatpush3.bf16.xpose.msra.mxu1 %v407_v20  ;;  %1679 = vrsqrt.f32 %v141_v51 }
  0xcc   :  { %1601 = vmatprep.subr.bf16.mxu0 %v408_v45  ;;  %1630 = vmatprep.subr.bf16.mxu1 %v408_v45  ;;  %1681 = vrsqrt.f32 %v140_v54  ;;  %v107_v57 = vpop.xlane.xlu1 %106  ;;  %v105_v60 = vpop.xlane.xlu0 %104 }
  0xcd   :  { %1683 = vrsqrt.f32 %v370_v55  ;;  %v135_v34 = vmax.f32 %v107_v57, 1e-24  ;;  %v134_v17 = vmax.f32 %v105_v60, 1e-24 }
  0xce   :  { %1685 = vrsqrt.f32 %v369_v23 }
  0xcf   :  { %1687 = vrsqrt.f32 %v372_v12 }
  0xd0   :  { %v123_v2 = vpop.xlane.xlu1 %122  ;;  %v121_v3 = vpop.xlane.xlu0 %120  ;;  %1689 = vrsqrt.f32 %v371_v7 }
  0xd1   :  { %v1676_v4 = vpop.eup %1675  ;;  %v143_v32 = vmax.f32 %v123_v2, 1e-24  ;;  %v142_v33 = vmax.f32 %v121_v3, 1e-24  ;;  %1691 = vrsqrt.f32 %v135_v34 }
  0xd2   :  { %v1678_v5 = vpop.eup %1677  ;;  %v165_v13 = vmul.f32 %v1676_v4, %v1986_v52  ;;  %1693 = vrsqrt.f32 %v134_v17 }
  0xd3   :  { %1602 = vmatpush3.bf16.xpose.msra.mxu0 %v408_v45  ;;  %1638 = vmatpush3.bf16.xpose.msra.mxu1 %v408_v45  ;;  %v164_v28 = vmul.f32 %v1678_v5, %v1988_v53  ;;  %v410_v53 = vpack.c.bf16 %v400_v6, %v399_v29  ;;  %1695 = vrsqrt.f32 %v143_v32 }
  0xd4   :  { %1603 = vmatprep.subr.bf16.mxu0 %v409_v63  ;;  %1631 = vmatprep.subr.bf16.mxu1 %v409_v63  ;;  %v111_v8 = vpop.xlane.xlu1 %110  ;;  %v109_v11 = vpop.xlane.xlu0 %108  ;;  %1697 = vrsqrt.f32 %v142_v33 }
  0xd5   :  { %v1680_v14 = vpop.eup %1679  ;;  %v180_v15 = vpack.c.bf16 %v165_v13, %v164_v28  ;;  %v136_v44 = vmax.f32 %v109_v11, 1e-24 }
  0xd6   :  { %v1682_v20 = vpop.eup %1681  ;;  %v173_v52 = vmul.f32 %v1680_v14, %v2000_v58 }
  0xd7   :  { %1611 = vmatprep.mubr.bf16.mxu0 %v180_v15  ;;  %v172_v21 = vmul.f32 %v1682_v20, %v2002_v59  ;;  %v1684_v24 = vpop.eup %1683  ;;  %v137_v59 = vmax.f32 %v111_v8, 1e-24 }
  0xd8   :  { %v1686_v25 = vpop.eup %1685  ;;  %v127_v30 = vpop.xlane.xlu1 %126  ;;  %v402_v58 = vmul.f32 %v1684_v24, %v1958_v40 }
  0xd9   :  { %v184_v31 = vpack.c.bf16 %v173_v52, %v172_v21  ;;  %v125_v35 = vpop.xlane.xlu0 %124  ;;  %v401_v16 = vmul.f32 %v1686_v25, %v1960_v41  ;;  %v1688_v39 = vpop.eup %1687  ;;  %v145_v50 = vmax.f32 %v127_v30, 1e-24  ;;  %1699 = vrsqrt.f32 %v137_v59 }
  0xda   :  { %v1690_v49 = vpop.eup %1689  ;;  %v144_v51 = vmax.f32 %v125_v35, 1e-24  ;;  %1701 = vrsqrt.f32 %v136_v44  ;;  %v404_v41 = vmul.f32 %v1688_v39, %v1972_v46  ;;  %v1871_v52 = vmov 0.0  }
  0xdb   :  { %1604 = vmatpush3.bf16.xpose.msra.mxu0 %v409_v63  ;;  %1639 = vmatpush3.bf16.xpose.msra.mxu1 %v409_v63  ;;  %v411_v45 = vpack.c.bf16 %v402_v58, %v401_v16  ;;  %v403_v40 = vmul.f32 %v1690_v49, %v1974_v47  ;;  %1703 = vrsqrt.f32 %v145_v50  ;;  %v1692_v60 = vpop.eup %1691  ;;  %v534_v47 = vlaneseq }
  0xdc   :  { %1605 = vmatprep.subr.bf16.mxu0 %v410_v53  ;;  %1632 = vmatprep.subr.bf16.mxu1 %v410_v53  ;;  %v115_v38 = vpop.xlane.xlu1 %114  ;;  %1705 = vrsqrt.f32 %v144_v51  ;;  %v1694_v62 = vpop.eup %1693  ;;  %v167_v12 = vmul.f32 %v1692_v60, %v2014_v0  ;;  %v2170_v0 = vld [vmem:[%s3115_s1] ss:$0 sm:$0xff] }
  0xdd   :  { %1619 = vmatprep.mubr.bf16.mxu1 %v184_v31  ;;  %v113_v48 = vpop.xlane.xlu0 %112  ;;  %v139_v55 = vmax.f32 %v115_v38, 1e-24  ;;  %v412_v56 = vpack.c.bf16 %v404_v41, %v403_v40  ;;  %v1696_v63 = vpop.eup %1695  ;;  %v2158_v13 = vand.u32 127, %v534_v47  ;;  %v166_v7 = vmul.f32 %v1694_v62, %v2016_v1 }
  0xde   :  { %v138_v22 = vmax.f32 %v113_v48, 1e-24  ;;  %v1698_v2 = vpop.eup %1697  ;;  %v175_v29 = vmul.f32 %v1696_v63, %v2028_v9 }
  0xdf   :  { %1707 = vrsqrt.f32 %v139_v55  ;;  %v174_v28 = vmul.f32 %v1698_v2, %v2030_v10  ;;  %vm539_vm1 = vcmp.lt.s32.totalorder %v2158_v13, 8 }
  0xe0   :  { %v131_v54 = vpop.xlane.xlu1 %130  ;;  %1709 = vrsqrt.f32 %v138_v22 }
  0xe1   :  { %v129_v23 = vpop.xlane.xlu0 %128  ;;  %v147_v57 = vmax.f32 %v131_v54, 1e-24  ;;  %v185_v20 = vpack.c.bf16 %v175_v29, %v174_v28 }
  0xe2   :  { %v146_v61 = vmax.f32 %v129_v23, 1e-24 }
  0xe3   :  { %1606 = vmatpush3.bf16.xpose.msra.mxu0 %v410_v53  ;;  %1640 = vmatpush3.bf16.xpose.msra.mxu1 %v410_v53  ;;  %1711 = vrsqrt.f32 %v147_v57  ;;  %v1700_v46 = vpop.eup %1699 }
  0xe4   :  { %1607 = vmatprep.subr.bf16.mxu0 %v411_v45  ;;  %1633 = vmatprep.subr.bf16.mxu1 %v411_v45  ;;  %1713 = vrsqrt.f32 %v146_v61  ;;  %v1702_v3 = vpop.eup %1701  ;;  %v169_v6 = vmul.f32 %v1700_v46, %v2042_v18  ;;  %v562_v1 = vpop.permute.xlu1 %561  ;;  %v181_v18 = vpack.c.bf16 %v167_v12, %v166_v7  ;;  %v1872_v61 = vmov -1e+30  }
  0xe5   :  { %v1704_v4 = vpop.eup %1703  ;;  %v168_v8 = vmul.f32 %v1702_v3, %v2044_v19  ;;  %vm610_vm0 = vcmp.eq.s32.totalorder %v562_v1, %v2170_v0 }
  0xe6   :  { %v1706_v5 = vpop.eup %1705  ;;  %v177_v14 = vmul.f32 %v1704_v4, %v2056_v26  ;;  %vm626_vm2 = vmand %vm610_vm0, %vm539_vm1 }
  0xe7   :  { %v176_v11 = vmul.f32 %v1706_v5, %v2058_v27  ;;  %v182_v26 = vpack.c.bf16 %v169_v6, %v168_v8  ;;  %v2177_v21 = vsel %vm626_vm2, 1.0, %v1871_v52 }
  0xe8   :  { %1204 = vadd.xlane.f32.xlu1 %v2177_v21  ;;  %v565_v31 = vpop.permute.xlu1 %564 }
  0xe9   :  { %v1708_v15 = vpop.eup %1707  ;;  %v186_v27 = vpack.c.bf16 %v177_v14, %v176_v11  ;;  %vm611_vm4 = vcmp.eq.s32.totalorder %v565_v31, %v2170_v0 }
  0xea   :  { %v1710_v10 = vpop.eup %1709  ;;  %v171_v24 = vmul.f32 %v1708_v15, %v2070_v36  ;;  %vm627_vm7 = vmand %vm611_vm4, %vm539_vm1 }
  0xeb   :  { %1608 = vmatpush3.bf16.xpose.msra.mxu0 %v411_v45  ;;  %1641 = vmatpush3.bf16.xpose.msra.mxu1 %v411_v45  ;;  %v170_v53 = vmul.f32 %v1710_v10, %v2072_v37  ;;  %v2204_v58 = vsel %vm627_vm7, 1.0, %v1871_v52 }
  0xec   :  { %1609 = vmatprep.subr.bf16.mxu0 %v412_v56  ;;  %1634 = vmatprep.subr.bf16.mxu1 %v412_v56  ;;  %v568_v17 = vpop.permute.xlu1 %567 }
  0xed   :  { %v1712_v9 = vpop.eup %1711  ;;  %v183_v35 = vpack.c.bf16 %v171_v24, %v170_v53  ;;  %vm612_vm3 = vcmp.eq.s32.totalorder %v568_v17, %v2170_v0 }
  0xee   :  { %v1714_v19 = vpop.eup %1713  ;;  %v179_v30 = vmul.f32 %v1712_v9, %v2078_v42  ;;  %vm628_vm5 = vmand %vm612_vm3, %vm539_vm1  ;;  %v559_v42 = vpop.permute.xlu0 %558 }
  0xef   :  { %v178_v25 = vmul.f32 %v1714_v19, %v2080_v43  ;;  %v2189_v36 = vsel %vm628_vm5, 1.0, %v1871_v52  ;;  %vm609_vm6 = vcmp.eq.s32.totalorder %v559_v42, %v2170_v0 }
  0xf0   :  { %v571_v37 = vpop.permute.xlu1 %570  ;;  %1208 = vadd.xlane.f32.xlu1 %v2189_v36  ;;  %vm625_vm9 = vmand %vm609_vm6, %vm539_vm1 }
  0xf1   :  { %v187_v34 = vpack.c.bf16 %v179_v30, %v178_v25  ;;  %vm613_vm8 = vcmp.eq.s32.totalorder %v571_v37, %v2170_v0  ;;  %v2199_v43 = vsel %vm625_vm9, 1.0, %v1871_v52 }
  0xf2   :  { %1202 = vadd.xlane.f32.xlu0 %v2199_v43  ;;  %vm629_vm11 = vmand %vm613_vm8, %vm539_vm1  ;;  %v586_v32 = vpop.permute.xlu0 %585 }
  0xf3   :  { %1610 = vmatpush3.bf16.xpose.msra.mxu0 %v412_v56  ;;  %1642 = vmatpush3.bf16.xpose.msra.mxu1 %v412_v56  ;;  %v2217_v38 = vsel %vm629_vm11, 1.0, %v1871_v52  ;;  %vm618_vm15 = vcmp.eq.s32.totalorder %v586_v32, %v2170_v0 }
  0xf4   :  { %v574_v16 = vpop.permute.xlu1 %573  ;;  %vm634_vm2 = vmand %vm618_vm15, %vm539_vm1 }
  0xf5   :  { %vm614_vm10 = vcmp.eq.s32.totalorder %v574_v16, %v2170_v0  ;;  %v2239_v50 = vsel %vm634_vm2, 1.0, %v1871_v52 }
  0xf6   :  { %vm630_vm12 = vmand %vm614_vm10, %vm539_vm1  ;;  %1206 = vadd.xlane.f32.xlu0 %v2204_v58  ;;  %v592_v39 = vpop.permute.xlu0 %591 }
  0xf7   :  { %v2211_v33 = vsel %vm630_vm12, 1.0, %v1871_v52  ;;  %vm620_vm4 = vcmp.eq.s32.totalorder %v592_v39, %v2170_v0 }
  0xf8   :  { %v577_v59 = vpop.permute.xlu1 %576  ;;  %1212 = vadd.xlane.f32.xlu1 %v2211_v33  ;;  %vm636_vm6 = vmand %vm620_vm4, %vm539_vm1 }
  0xf9   :  { %vm615_vm13 = vcmp.eq.s32.totalorder %v577_v59, %v2170_v0  ;;  %v2253_v54 = vsel %vm636_vm6, 1.0, %v1871_v52 }
  0xfa   :  { %1612 = vmatmul.mubr.bf16.vlgmr.msra.gmra.mrb[0].mxu0 %v181_v18  ;;  %1620 = vmatmul.mubr.bf16.vlgmr.msra.gmra.mrb[0].mxu1 %v185_v20  ;;  %vm631_vm14 = vmand %vm615_vm13, %vm539_vm1  ;;  %v598_v51 = vpop.permute.xlu0 %597 }
  0xfb   :  { %1615 = vmatprep.mubr.bf16.mxu0 %v182_v26  ;;  %1623 = vmatprep.mubr.bf16.mxu1 %v186_v27  ;;  %v2225_v45 = vsel %vm631_vm14, 1.0, %v1871_v52  ;;  %vm622_vm8 = vcmp.eq.s32.totalorder %v598_v51, %v2170_v0 }
  0xfc   :  { %v580_v44 = vpop.permute.xlu1 %579  ;;  %1210 = vadd.xlane.f32.xlu0 %v2217_v38  ;;  %vm638_vm10 = vmand %vm622_vm8, %vm539_vm1 }
  0xfd   :  { %vm616_vm0 = vcmp.eq.s32.totalorder %v580_v44, %v2170_v0  ;;  %v2266_v22 = vsel %vm638_vm10, 1.0, %v1871_v52 }
  0xfe   :  { %vm632_vm3 = vmand %vm616_vm0, %vm539_vm1  ;;  %vm196_vm0 = vcmask 7168   ;;  %v2395_v47 = vpop.permute.xlu0 %603 }
  0xff   :  { %v2233_v48 = vsel %vm632_vm3, 1.0, %v1871_v52  ;;  %245 = vst.msk [vmem:[#allocation6] sm:$0xff] %vm196_vm0, %v1871_v52  ;;  %213 = vst.msk [vmem:[#allocation4] sm:$0xff] %vm196_vm0, %v1871_v52  ;;  %vm624_vm2 = vcmp.eq.s32.totalorder %v2395_v47, %v2170_v0 }
 0x100   :  { %v583_v49 = vpop.permute.xlu1 %582  ;;  %1214 = vadd.xlane.f32.xlu0 %v2225_v45  ;;  %1216 = vadd.xlane.f32.xlu1 %v2233_v48  ;;  %214 = vst.msk [vmem:[#allocation4 + $0x8] sm:$0xff] %vm196_vm0, %v1871_v52  ;;  %215 = vst.msk [vmem:[#allocation4 + $0x10] sm:$0xff] %vm196_vm0, %v1871_v52 }
 0x101   :  { %vm617_vm5 = vcmp.eq.s32.totalorder %v583_v49, %v2170_v0  ;;  %216 = vst.msk [vmem:[#allocation4 + $0x18] sm:$0xff] %vm196_vm0, %v1871_v52  ;;  %217 = vst.msk [vmem:[#allocation4 + $0x20] sm:$0xff] %vm196_vm0, %v1871_v52 }
 0x102   :  { %1616 = vmatmul.mubr.bf16.gmra.mrb[4].mxu0 %v183_v35  ;;  %1624 = vmatmul.mubr.bf16.gmra.mrb[4].mxu1 %v187_v34  ;;  %vm633_vm7 = vmand %vm617_vm5, %vm539_vm1  ;;  %218 = vst.msk [vmem:[#allocation4 + $0x28] sm:$0xff] %vm196_vm0, %v1871_v52 }
 0x103   :  { %v2247_v40 = vsel %vm633_vm7, 1.0, %v1871_v52  ;;  %219 = vst.msk [vmem:[#allocation4 + $0x30] sm:$0xff] %vm196_vm0, %v1871_v52  ;;  %220 = vst.msk [vmem:[#allocation4 + $0x38] sm:$0xff] %vm196_vm0, %v1871_v52 }
 0x104   :  { %v589_v41 = vpop.permute.xlu1 %588  ;;  %1218 = vadd.xlane.f32.xlu0 %v2247_v40  ;;  %1220 = vadd.xlane.f32.xlu1 %v2239_v50  ;;  %221 = vst.msk [vmem:[#allocation4 + $0x40] sm:$0xff] %vm196_vm0, %v1871_v52  ;;  %222 = vst.msk [vmem:[#allocation4 + $0x48] sm:$0xff] %vm196_vm0, %v1871_v52 }
 0x105   :  { %vm619_vm9 = vcmp.eq.s32.totalorder %v589_v41, %v2170_v0  ;;  %223 = vst.msk [vmem:[#allocation4 + $0x50] sm:$0xff] %vm196_vm0, %v1871_v52  ;;  %224 = vst.msk [vmem:[#allocation4 + $0x58] sm:$0xff] %vm196_vm0, %v1871_v52 }
 0x106   :  { %vm635_vm11 = vmand %vm619_vm9, %vm539_vm1  ;;  %225 = vst.msk [vmem:[#allocation4 + $0x60] sm:$0xff] %vm196_vm0, %v1871_v52  ;;  %v1186_v4 = vld [vmem:[#allocation6] sm:$0xff] }
 0x107   :  { %v2260_v55 = vsel %vm635_vm11, 1.0, %v1871_v52  ;;  %226 = vst.msk [vmem:[#allocation4 + $0x68] sm:$0xff] %vm196_vm0, %v1871_v52  ;;  %227 = vst.msk [vmem:[#allocation4 + $0x70] sm:$0xff] %vm196_vm0, %v1871_v52 }
 0x108   :  { %v595_v23 = vpop.permute.xlu1 %594  ;;  %1222 = vadd.xlane.f32.xlu0 %v2260_v55  ;;  %1224 = vadd.xlane.f32.xlu1 %v2253_v54  ;;  %228 = vst.msk [vmem:[#allocation4 + $0x78] sm:$0xff] %vm196_vm0, %v1871_v52  ;;  %229 = vst.msk [vmem:[#allocation5] sm:$0xff] %vm196_vm0, %v1871_v52 }
 0x109   :  { %vm621_vm12 = vcmp.eq.s32.totalorder %v595_v23, %v2170_v0  ;;  %230 = vst.msk [vmem:[#allocation5 + $0x8] sm:$0xff] %vm196_vm0, %v1871_v52  ;;  %231 = vst.msk [vmem:[#allocation5 + $0x10] sm:$0xff] %vm196_vm0, %v1871_v52 }
 0x10a   :  { %vm637_vm13 = vmand %vm621_vm12, %vm539_vm1  ;;  %232 = vst.msk [vmem:[#allocation5 + $0x18] sm:$0xff] %vm196_vm0, %v1871_v52 }
 0x10b   :  { %v2271_v56 = vsel %vm637_vm13, 1.0, %v1871_v52  ;;  %233 = vst.msk [vmem:[#allocation5 + $0x20] sm:$0xff] %vm196_vm0, %v1871_v52  ;;  %234 = vst.msk [vmem:[#allocation5 + $0x28] sm:$0xff] %vm196_vm0, %v1871_v52 }
 0x10c   :  { %v601_v57 = vpop.permute.xlu1 %600  ;;  %1226 = vadd.xlane.f32.xlu0 %v2271_v56  ;;  %1228 = vadd.xlane.f32.xlu1 %v2266_v22  ;;  %235 = vst.msk [vmem:[#allocation5 + $0x30] sm:$0xff] %vm196_vm0, %v1871_v52  ;;  %236 = vst.msk [vmem:[#allocation5 + $0x38] sm:$0xff] %vm196_vm0, %v1871_v52 }
 0x10d   :  { %vm623_vm14 = vcmp.eq.s32.totalorder %v601_v57, %v2170_v0  ;;  %237 = vst.msk [vmem:[#allocation5 + $0x40] sm:$0xff] %vm196_vm0, %v1871_v52  ;;  %238 = vst.msk [vmem:[#allocation5 + $0x48] sm:$0xff] %vm196_vm0, %v1871_v52 }
 0x10e   :  { %vm639_vm15 = vmand %vm623_vm14, %vm539_vm1  ;;  %239 = vst.msk [vmem:[#allocation5 + $0x50] sm:$0xff] %vm196_vm0, %v1871_v52 }
 0x10f   :  { %v2279_v60 = vsel %vm639_vm15, 1.0, %v1871_v52  ;;  %240 = vst.msk [vmem:[#allocation5 + $0x58] sm:$0xff] %vm196_vm0, %v1871_v52  ;;  %241 = vst.msk [vmem:[#allocation5 + $0x60] sm:$0xff] %vm196_vm0, %v1871_v52 }
 0x110   :  { %1230 = vadd.xlane.f32.xlu0 %v2279_v60  ;;  %242 = vst.msk [vmem:[#allocation5 + $0x68] sm:$0xff] %vm196_vm0, %v1871_v52  ;;  %243 = vst.msk [vmem:[#allocation5 + $0x70] sm:$0xff] %vm196_vm0, %v1871_v52 }
 0x111   :  { %244 = vst.msk [vmem:[#allocation5 + $0x78] sm:$0xff] %vm196_vm0, %v1871_v52  ;;  %246 = vst.msk [vmem:[#allocation6 + $0x8] sm:$0xff] %vm196_vm0, %v1871_v52 }
 0x112   :  { %247 = vst.msk [vmem:[#allocation6 + $0x10] sm:$0xff] %vm196_vm0, %v1871_v52  ;;  %248 = vst.msk [vmem:[#allocation6 + $0x18] sm:$0xff] %vm196_vm0, %v1871_v52 }
 0x113   :  { %249 = vst.msk [vmem:[#allocation6 + $0x20] sm:$0xff] %vm196_vm0, %v1871_v52  ;;  %250 = vst.msk [vmem:[#allocation6 + $0x28] sm:$0xff] %vm196_vm0, %v1871_v52 }
 0x114   :  { %251 = vst.msk [vmem:[#allocation6 + $0x30] sm:$0xff] %vm196_vm0, %v1871_v52  ;;  %252 = vst.msk [vmem:[#allocation6 + $0x38] sm:$0xff] %vm196_vm0, %v1871_v52 }
 0x115   :  { %253 = vst.msk [vmem:[#allocation6 + $0x40] sm:$0xff] %vm196_vm0, %v1871_v52  ;;  %254 = vst.msk [vmem:[#allocation6 + $0x48] sm:$0xff] %vm196_vm0, %v1871_v52 }
 0x116   :  { %255 = vst.msk [vmem:[#allocation6 + $0x50] sm:$0xff] %vm196_vm0, %v1871_v52  ;;  %256 = vst.msk [vmem:[#allocation6 + $0x58] sm:$0xff] %vm196_vm0, %v1871_v52 }
 0x117   :  { %257 = vst.msk [vmem:[#allocation6 + $0x60] sm:$0xff] %vm196_vm0, %v1871_v52  ;;  %258 = vst.msk [vmem:[#allocation6 + $0x68] sm:$0xff] %vm196_vm0, %v1871_v52 }
 0x118   :  { %259 = vst.msk [vmem:[#allocation6 + $0x70] sm:$0xff] %vm196_vm0, %v1871_v52  ;;  %260 = vst.msk [vmem:[#allocation6 + $0x78] sm:$0xff] %vm196_vm0, %v1871_v52  ;;  %v1187_v62 = vld [vmem:[#allocation6 + $0x8] sm:$0xff] }
 0x119   :  { %199 = vst.msk [vmem:[#allocation3 + $0x10] sm:$0xff] %vm196_vm0, %v1872_v61  ;;  %197 = vst.msk [vmem:[#allocation3] sm:$0xff] %vm196_vm0, %v1872_v61  ;;  %v1189_v46 = vld [vmem:[#allocation6 + $0x18] sm:$0xff]  ;;  %v1188_v28 = vld [vmem:[#allocation6 + $0x10] sm:$0xff] }
 0x11a   :  { %198 = vst.msk [vmem:[#allocation3 + $0x8] sm:$0xff] %vm196_vm0, %v1872_v61  ;;  %200 = vst.msk [vmem:[#allocation3 + $0x18] sm:$0xff] %vm196_vm0, %v1872_v61  ;;  %v1191_v29 = vld [vmem:[#allocation6 + $0x28] sm:$0xff]  ;;  %v1190_v15 = vld [vmem:[#allocation6 + $0x20] sm:$0xff] }
 0x11b   :  { %201 = vst.msk [vmem:[#allocation3 + $0x20] sm:$0xff] %vm196_vm0, %v1872_v61  ;;  %202 = vst.msk [vmem:[#allocation3 + $0x28] sm:$0xff] %vm196_vm0, %v1872_v61  ;;  %v1192_v9 = vld [vmem:[#allocation6 + $0x30] sm:$0xff]  ;;  %v1193_v18 = vld [vmem:[#allocation6 + $0x38] sm:$0xff] }
 0x11c   :  { %203 = vst.msk [vmem:[#allocation3 + $0x30] sm:$0xff] %vm196_vm0, %v1872_v61  ;;  %204 = vst.msk [vmem:[#allocation3 + $0x38] sm:$0xff] %vm196_vm0, %v1872_v61  ;;  %v1194_v24 = vld [vmem:[#allocation6 + $0x40] sm:$0xff]  ;;  %v1195_v53 = vld [vmem:[#allocation6 + $0x48] sm:$0xff] }
 0x11d   :  { %205 = vst.msk [vmem:[#allocation3 + $0x40] sm:$0xff] %vm196_vm0, %v1872_v61  ;;  %206 = vst.msk [vmem:[#allocation3 + $0x48] sm:$0xff] %vm196_vm0, %v1872_v61  ;;  %v1196_v34 = vld [vmem:[#allocation6 + $0x50] sm:$0xff]  ;;  %v1197_v17 = vld [vmem:[#allocation6 + $0x58] sm:$0xff] }
 0x11e   :  { %207 = vst.msk [vmem:[#allocation3 + $0x50] sm:$0xff] %vm196_vm0, %v1872_v61  ;;  %208 = vst.msk [vmem:[#allocation3 + $0x58] sm:$0xff] %vm196_vm0, %v1872_v61  ;;  %v1198_v59 = vld [vmem:[#allocation6 + $0x60] sm:$0xff]  ;;  %v1199_v39 = vld [vmem:[#allocation6 + $0x68] sm:$0xff] }
 0x11f   :  { %209 = vst.msk [vmem:[#allocation3 + $0x60] sm:$0xff] %vm196_vm0, %v1872_v61  ;;  %210 = vst.msk [vmem:[#allocation3 + $0x68] sm:$0xff] %vm196_vm0, %v1872_v61  ;;  %v1200_v23 = vld [vmem:[#allocation6 + $0x70] sm:$0xff] }
 0x120   :  { %211 = vst.msk [vmem:[#allocation3 + $0x70] sm:$0xff] %vm196_vm0, %v1872_v61  ;;  %212 = vst.msk [vmem:[#allocation3 + $0x78] sm:$0xff] %vm196_vm0, %v1872_v61 }
 0x121   :  { %vm640_vm3 = vmand %vm624_vm2, %vm539_vm1 }
 0x175   :  { %v1205_v63 = vpop.xlane.xlu1 %1204 }
 0x176   :  { %v1235_v2 = vadd.f32 %v1205_v63, %v1187_v62 }
 0x178   :  { %1251 = vst.msk [vmem:[#allocation6 + $0x8] sm:$0xff] %vm196_vm0, %v1235_v2 }
 0x17d   :  { %v1209_v3 = vpop.xlane.xlu1 %1208 }
 0x17e   :  { %v1237_v5 = vadd.f32 %v1209_v3, %v1189_v46 }
 0x17f   :  { %v1203_v12 = vpop.xlane.xlu0 %1202 }
 0x180   :  { %1253 = vst.msk [vmem:[#allocation6 + $0x18] sm:$0xff] %vm196_vm0, %v1237_v5  ;;  %v1234_v7 = vadd.f32 %v1203_v12, %v1186_v4 }
 0x182   :  { %1250 = vst.msk [vmem:[#allocation6] sm:$0xff] %vm196_vm0, %v1234_v7 }
 0x183   :  { %v1207_v6 = vpop.xlane.xlu0 %1206 }
 0x184   :  { %v1236_v11 = vadd.f32 %v1207_v6, %v1188_v28 }
 0x185   :  { %v1213_v8 = vpop.xlane.xlu1 %1212 }
 0x186   :  { %v1239_v14 = vadd.f32 %v1213_v8, %v1191_v29  ;;  %1252 = vst.msk [vmem:[#allocation6 + $0x10] sm:$0xff] %vm196_vm0, %v1236_v11 }
 0x188   :  { %1255 = vst.msk [vmem:[#allocation6 + $0x28] sm:$0xff] %vm196_vm0, %v1239_v14 }
 0x189   :  { %v1211_v1 = vpop.xlane.xlu0 %1210 }
 0x18a   :  { %v1238_v10 = vadd.f32 %v1211_v1, %v1190_v15 }
 0x18c   :  { %1254 = vst.msk [vmem:[#allocation6 + $0x20] sm:$0xff] %vm196_vm0, %v1238_v10 }
 0x18d   :  { %v1215_v20 = vpop.xlane.xlu0 %1214  ;;  %v1217_v19 = vpop.xlane.xlu1 %1216 }
 0x18e   :  { %v1240_v26 = vadd.f32 %v1215_v20, %v1192_v9  ;;  %v1241_v27 = vadd.f32 %v1217_v19, %v1193_v18 }
 0x190   :  { %1256 = vst.msk [vmem:[#allocation6 + $0x30] sm:$0xff] %vm196_vm0, %v1240_v26  ;;  %1257 = vst.msk [vmem:[#allocation6 + $0x38] sm:$0xff] %vm196_vm0, %v1241_v27 }
 0x191   :  { %v1219_v25 = vpop.xlane.xlu0 %1218  ;;  %v1221_v30 = vpop.xlane.xlu1 %1220 }
 0x192   :  { %v1242_v31 = vadd.f32 %v1219_v25, %v1194_v24  ;;  %v1243_v35 = vadd.f32 %v1221_v30, %v1195_v53 }
 0x194   :  { %1258 = vst.msk [vmem:[#allocation6 + $0x40] sm:$0xff] %vm196_vm0, %v1242_v31  ;;  %1259 = vst.msk [vmem:[#allocation6 + $0x48] sm:$0xff] %vm196_vm0, %v1243_v35 }
 0x195   :  { %v1223_v37 = vpop.xlane.xlu0 %1222  ;;  %v1225_v42 = vpop.xlane.xlu1 %1224 }
 0x196   :  { %v1244_v16 = vadd.f32 %v1223_v37, %v1196_v34  ;;  %v1245_v32 = vadd.f32 %v1225_v42, %v1197_v17 }
 0x198   :  { %1260 = vst.msk [vmem:[#allocation6 + $0x50] sm:$0xff] %vm196_vm0, %v1244_v16  ;;  %1261 = vst.msk [vmem:[#allocation6 + $0x58] sm:$0xff] %vm196_vm0, %v1245_v32 }
 0x199   :  { %v1227_v44 = vpop.xlane.xlu0 %1226  ;;  %v1229_v49 = vpop.xlane.xlu1 %1228 }
 0x19a   :  { %v1246_v51 = vadd.f32 %v1227_v44, %v1198_v59  ;;  %v1247_v41 = vadd.f32 %v1229_v49, %v1199_v39 }
 0x19c   :  { %1262 = vst.msk [vmem:[#allocation6 + $0x60] sm:$0xff] %vm196_vm0, %v1246_v51  ;;  %1263 = vst.msk [vmem:[#allocation6 + $0x68] sm:$0xff] %vm196_vm0, %v1247_v41 }
 0x19d   :  { %v1231_v57 = vpop.xlane.xlu0 %1230 }
 0x19e   :  { %v1248_v61 = vadd.f32 %v1231_v57, %v1200_v23 }
 0x1a0   :  { %1264 = vst.msk [vmem:[#allocation6 + $0x70] sm:$0xff] %vm196_vm0, %v1248_v61 }
 0x1cd   :  { %v1613_v62 = vpop.f32.mrb[0].mxu0  ;;  %v1621_v63 = vpop.f32.mrb[0].mxu1 }
 0x1ce   :  { %v2411_v2 = vmul.f32 1.4285715, %v1613_v62  ;;  %v455_v46 = vpop.f32.mrb[1].mxu0  ;;  %v487_v3 = vpop.f32.mrb[1].mxu1  ;;  %v2413_v29 = vmul.f32 1.4285715, %v1621_v63 }
 0x1cf   :  { %v518_v4 = vmul.f32 1.4285715, %v455_v46  ;;  %v1614_v5 = vpop.f32.mrb[2].mxu0  ;;  %v1622_v12 = vpop.f32.mrb[2].mxu1  ;;  %v2439_v20 = vmul.f32 1.4285715, %v487_v3 }
 0x1d0   :  { %v458_v7 = vpop.f32.mrb[3].mxu0  ;;  %v490_v28 = vpop.f32.mrb[3].mxu1  ;;  %v2418_v6 = vsel %vm539_vm1, %v2411_v2, -1e+30  ;;  %v2420_v8 = vmul.f32 1.4285715, %v1614_v5  ;;  %v1108_v0 = vmul.f32 %v2204_v58, %v2411_v2 }
 0x1d1   :  { %709 = vmax.xlane.f32.xlu0 %v2418_v6  ;;  %v2425_v11 = vsel %vm539_vm1, %v518_v4, -1e+30  ;;  %v2431_v14 = vsel %vm539_vm1, %v2413_v29, -1e+30  ;;  %v2442_v27 = vmul.f32 1.4285715, %v1622_v12  ;;  %v1106_v3 = vmul.f32 %v2199_v43, %v518_v4 }
 0x1d2   :  { %705 = vmax.xlane.f32.xlu1 %v2425_v11  ;;  %v2437_v18 = vsel %vm539_vm1, %v2420_v8, -1e+30  ;;  %v519_v25 = vmul.f32 1.4285715, %v458_v7  ;;  %v2447_v30 = vsel %vm539_vm1, %v2439_v20, -1e+30  ;;  %v1109_v12 = vmul.f32 %v2189_v36, %v2420_v8 }
 0x1d3   :  { %v2453_v31 = vsel %vm539_vm1, %v2442_v27, -1e+30  ;;  %v2456_v35 = vmul.f32 1.4285715, %v490_v28  ;;  %v2536_v5 = vsel %vm640_vm3, 1.0, %v1871_v52  ;;  %v2545_v4 = vld [vmem:[#allocation3 + $0x10] sm:$0xff] }
 0x1d4   :  { %v2462_v17 = vsel %vm539_vm1, %v519_v25, -1e+30  ;;  %v1107_v47 = vmul.f32 %v2177_v21, %v519_v25  ;;  %v2547_v52 = vld [vmem:[#allocation3] sm:$0xff]  ;;  %v2562_v8 = vld [vmem:[#allocation3 + $0x18] sm:$0xff] }
 0x1d5   :  { %v1617_v15 = vpop.f32.mrb[4].mxu0  ;;  %v1625_v1 = vpop.f32.mrb[4].mxu1  ;;  %725 = vmax.xlane.f32.xlu0 %v2431_v14  ;;  %v2470_v42 = vsel %vm539_vm1, %v2456_v35, -1e+30  ;;  %3145 = vst [vmem:[#allocation10_spill] sm:$0xff] %v2547_v52  ;;  %v2575_v25 = vld [vmem:[#allocation3 + $0x40] sm:$0xff] }
 0x1d6   :  { %v471_v10 = vpop.f32.mrb[5].mxu0  ;;  %v503_v9 = vpop.f32.mrb[5].mxu1  ;;  %711 = vmax.xlane.f32.xlu1 %v2437_v18  ;;  %v2458_v34 = vmul.f32 1.4285715, %v1617_v15  ;;  %v2483_v59 = vmul.f32 1.4285715, %v1625_v1 }
 0x1d7   :  { %v1618_v19 = vpop.f32.mrb[6].mxu0  ;;  %v1626_v26 = vpop.f32.mrb[6].mxu1  ;;  %v522_v51 = vmul.f32 1.4285715, %v471_v10  ;;  %v2512_v61 = vmul.f32 1.4285715, %v503_v9 }
 0x1d8   :  { %v474_v24 = vpop.f32.mrb[7].mxu0  ;;  %v506_v53 = vpop.f32.mrb[7].mxu1  ;;  %v2464_v37 = vmul.f32 1.4285715, %v1618_v19  ;;  %v2476_v16 = vsel %vm539_vm1, %v2458_v34, -1e+30 }
 0x1d9   :  { %721 = vmax.xlane.f32.xlu0 %v2447_v30  ;;  %v2485_v39 = vmul.f32 1.4285715, %v1626_v26  ;;  %v2492_v44 = vsel %vm539_vm1, %v2483_v59, -1e+30  ;;  %v2499_v41 = vmul.f32 1.4285715, %v474_v24  ;;  %v1110_v13 = vmul.f32 %v2217_v38, %v522_v51 }
 0x1da   :  { %727 = vmax.xlane.f32.xlu1 %v2453_v31  ;;  %v2481_v32 = vsel %vm539_vm1, %v2464_v37, -1e+30  ;;  %v2505_v23 = vsel %vm539_vm1, %v522_v51, -1e+30  ;;  %v2514_v62 = vmul.f32 1.4285715, %v506_v53 }
 0x1db   :  { %v2497_v49 = vsel %vm539_vm1, %v2485_v39, -1e+30  ;;  %v2510_v57 = vsel %vm539_vm1, %v2499_v41, -1e+30  ;;  %v2521_v63 = vsel %vm539_vm1, %v2512_v61, -1e+30 }
 0x1dc   :  { %v2528_v46 = vsel %vm539_vm1, %v2514_v62, -1e+30  ;;  %v2555_v1 = vld [vmem:[#allocation3 + $0x50] sm:$0xff]  ;;  %3147 = vst [vmem:[#allocation12_spill] sm:$0xff] %v2575_v25 }
 0x1dd   :  { %707 = vmax.xlane.f32.xlu0 %v2462_v17  ;;  %v2615_v51 = vld [vmem:[#allocation3 + $0x30] sm:$0xff] }
 0x1de   :  { %723 = vmax.xlane.f32.xlu1 %v2470_v42  ;;  %3155 = vst [vmem:[#allocation20_spill] sm:$0xff] %v2615_v51 }
 0x1e1   :  { %717 = vmax.xlane.f32.xlu0 %v2476_v16 }
 0x1e2   :  { %719 = vmax.xlane.f32.xlu1 %v2481_v32 }
 0x1e5   :  { %733 = vmax.xlane.f32.xlu0 %v2492_v44 }
 0x1e6   :  { %735 = vmax.xlane.f32.xlu1 %v2497_v49 }
 0x1e9   :  { %713 = vmax.xlane.f32.xlu0 %v2505_v23 }
 0x1ea   :  { %715 = vmax.xlane.f32.xlu1 %v2510_v57 }
 0x1ed   :  { %729 = vmax.xlane.f32.xlu0 %v2521_v63 }
 0x1ee   :  { %731 = vmax.xlane.f32.xlu1 %v2528_v46 }
 0x1f1   :  { %1122 = vadd.xlane.f32.xlu0 %v1106_v3  ;;  %v2582_v3 = vld [vmem:[#allocation3 + $0x58] sm:$0xff] }
 0x1f2   :  { %1232 = vadd.xlane.f32.xlu1 %v2536_v5  ;;  %3148 = vst [vmem:[#allocation13_spill] sm:$0xff] %v2582_v3 }
 0x1f5   :  { %1126 = vadd.xlane.f32.xlu0 %v1108_v0 }
 0x1f6   :  { %1124 = vadd.xlane.f32.xlu1 %v1107_v47 }
 0x1f9   :  { %1130 = vadd.xlane.f32.xlu0 %v1110_v13 }
 0x1fa   :  { %1128 = vadd.xlane.f32.xlu1 %v1109_v12 }
 0x25e   :  { %v710_v7 = vpop.xlane.xlu0 %709 }
 0x25f   :  { %v2550_v28 = vmax.f32 %v2545_v4, %v710_v7  ;;  %v706_v2 = vpop.xlane.xlu1 %705 }
 0x260   :  { %v2553_v15 = vmax.f32 %v2547_v52, %v706_v2  ;;  %v2595_v2 = vld [vmem:[#allocation3 + $0x8] sm:$0xff]  ;;  %v1092_v52 = vld [vmem:[#allocation5 + $0x10] sm:$0xff] }
 0x261   :  { %1268 = vst.msk [vmem:[#allocation3 + $0x10] sm:$0xff] %vm196_vm0, %v2550_v28  ;;  %813 = vperm.xlu1 %1650, %v2550_v28   ;;  %3151 = vst [vmem:[#allocation16_spill] sm:$0xff] %v2595_v2 }
 0x262   :  { %3146 = vst [vmem:[#allocation11_spill] sm:$0xff] %v2553_v15  ;;  %1266 = vst.msk [vmem:[#allocation3] sm:$0xff] %vm196_vm0, %v2553_v15  ;;  %803 = vperm.xlu0 %1649, %v2553_v15   ;;  %v726_v19 = vpop.xlane.xlu0 %725 }
 0x263   :  { %v2570_v26 = vmax.f32 %v2555_v1, %v726_v19  ;;  %v712_v24 = vpop.xlane.xlu1 %711 }
 0x264   :  { %v2573_v53 = vmax.f32 %v2562_v8, %v712_v24  ;;  %v2602_v24 = vld [vmem:[#allocation3 + $0x48] sm:$0xff] }
 0x265   :  { %1276 = vst.msk [vmem:[#allocation3 + $0x50] sm:$0xff] %vm196_vm0, %v2570_v26  ;;  %853 = vperm.xlu1 %1650, %v2570_v26   ;;  %3152 = vst [vmem:[#allocation17_spill] sm:$0xff] %v2602_v24 }
 0x266   :  { %1269 = vst.msk [vmem:[#allocation3 + $0x18] sm:$0xff] %vm196_vm0, %v2573_v53  ;;  %818 = vperm.xlu0 %1649, %v2573_v53   ;;  %v722_v47 = vpop.xlane.xlu0 %721 }
 0x267   :  { %v2590_v13 = vmax.f32 %v2575_v25, %v722_v47  ;;  %v728_v12 = vpop.xlane.xlu1 %727  ;;  %v2622_v47 = vld [vmem:[#allocation3 + $0x38] sm:$0xff] }
 0x268   :  { %v2593_v7 = vmax.f32 %v2582_v3, %v728_v12  ;;  %3156 = vst [vmem:[#allocation21_spill] sm:$0xff] %v2622_v47 }
 0x269   :  { %3149 = vst [vmem:[#allocation14_spill] sm:$0xff] %v2590_v13  ;;  %1274 = vst.msk [vmem:[#allocation3 + $0x40] sm:$0xff] %vm196_vm0, %v2590_v13  ;;  %843 = vperm.xlu1 %1650, %v2590_v13  }
 0x26a   :  { %3150 = vst [vmem:[#allocation15_spill] sm:$0xff] %v2593_v7  ;;  %1277 = vst.msk [vmem:[#allocation3 + $0x58] sm:$0xff] %vm196_vm0, %v2593_v7  ;;  %858 = vperm.xlu0 %1649, %v2593_v7   ;;  %v708_v12 = vpop.xlane.xlu0 %707 }
 0x26b   :  { %v2610_v9 = vmax.f32 %v2595_v2, %v708_v12  ;;  %v724_v19 = vpop.xlane.xlu1 %723  ;;  %v2635_v2 = vld [vmem:[#allocation3 + $0x70] sm:$0xff]  ;;  %v2642_v12 = vld [vmem:[#allocation3 + $0x78] sm:$0xff] }
 0x26c   :  { %v2613_v0 = vmax.f32 %v2602_v24, %v724_v19  ;;  %3159 = vst [vmem:[#allocation24_spill] sm:$0xff] %v2635_v2  ;;  %3160 = vst [vmem:[#allocation25_spill] sm:$0xff] %v2642_v12  ;;  %v2655_v24 = vld [vmem:[#allocation3 + $0x20] sm:$0xff] }
 0x26d   :  { %3153 = vst [vmem:[#allocation18_spill] sm:$0xff] %v2610_v9  ;;  %1267 = vst.msk [vmem:[#allocation3 + $0x8] sm:$0xff] %vm196_vm0, %v2610_v9  ;;  %808 = vperm.xlu1 %1650, %v2610_v9  }
 0x26e   :  { %3154 = vst [vmem:[#allocation19_spill] sm:$0xff] %v2613_v0  ;;  %1275 = vst.msk [vmem:[#allocation3 + $0x48] sm:$0xff] %vm196_vm0, %v2613_v0  ;;  %848 = vperm.xlu0 %1649, %v2613_v0   ;;  %v718_v19 = vpop.xlane.xlu0 %717 }
 0x26f   :  { %v2630_v13 = vmax.f32 %v2615_v51, %v718_v19  ;;  %v720_v10 = vpop.xlane.xlu1 %719  ;;  %3163 = vst [vmem:[#allocation28_spill] sm:$0xff] %v2655_v24  ;;  %v2662_v19 = vld [vmem:[#allocation3 + $0x28] sm:$0xff] }
 0x270   :  { %v2633_v25 = vmax.f32 %v2622_v47, %v720_v10  ;;  %3164 = vst [vmem:[#allocation29_spill] sm:$0xff] %v2662_v19  ;;  %v2675_v47 = vld [vmem:[#allocation3 + $0x60] sm:$0xff] }
 0x271   :  { %3157 = vst [vmem:[#allocation22_spill] sm:$0xff] %v2630_v13  ;;  %1272 = vst.msk [vmem:[#allocation3 + $0x30] sm:$0xff] %vm196_vm0, %v2630_v13  ;;  %833 = vperm.xlu1 %1650, %v2630_v13  }
 0x272   :  { %3158 = vst [vmem:[#allocation23_spill] sm:$0xff] %v2633_v25  ;;  %1273 = vst.msk [vmem:[#allocation3 + $0x38] sm:$0xff] %vm196_vm0, %v2633_v25  ;;  %838 = vperm.xlu0 %1649, %v2633_v25   ;;  %v734_v10 = vpop.xlane.xlu0 %733 }
 0x273   :  { %v2650_v0 = vmax.f32 %v2635_v2, %v734_v10  ;;  %v736_v9 = vpop.xlane.xlu1 %735  ;;  %3167 = vst [vmem:[#allocation32_spill] sm:$0xff] %v2675_v47  ;;  %v2682_v10 = vld [vmem:[#allocation3 + $0x68] sm:$0xff] }
 0x274   :  { %v2653_v51 = vmax.f32 %v2642_v12, %v736_v9  ;;  %3168 = vst [vmem:[#allocation33_spill] sm:$0xff] %v2682_v10  ;;  %v1090_v12 = vld [vmem:[#allocation5] sm:$0xff] }
 0x275   :  { %3161 = vst [vmem:[#allocation26_spill] sm:$0xff] %v2650_v0  ;;  %1280 = vst.msk [vmem:[#allocation3 + $0x70] sm:$0xff] %vm196_vm0, %v2650_v0  ;;  %873 = vperm.xlu1 %1650, %v2650_v0  }
 0x276   :  { %3162 = vst [vmem:[#allocation27_spill] sm:$0xff] %v2653_v51  ;;  %1281 = vst.msk [vmem:[#allocation3 + $0x78] sm:$0xff] %vm196_vm0, %v2653_v51  ;;  %878 = vperm.xlu0 %1649, %v2653_v51   ;;  %v714_v9 = vpop.xlane.xlu0 %713 }
 0x277   :  { %v2670_v25 = vmax.f32 %v2655_v24, %v714_v9  ;;  %v716_v13 = vpop.xlane.xlu1 %715  ;;  %v1201_v9 = vld [vmem:[#allocation6 + $0x78] sm:$0xff] }
 0x278   :  { %v2673_v2 = vmax.f32 %v2662_v19, %v716_v13 }
 0x279   :  { %3165 = vst [vmem:[#allocation30_spill] sm:$0xff] %v2670_v25  ;;  %1270 = vst.msk [vmem:[#allocation3 + $0x20] sm:$0xff] %vm196_vm0, %v2670_v25  ;;  %823 = vperm.xlu1 %1650, %v2670_v25   ;;  %v1091_v25 = vld [vmem:[#allocation5 + $0x8] sm:$0xff] }
 0x27a   :  { %3166 = vst [vmem:[#allocation31_spill] sm:$0xff] %v2673_v2  ;;  %1271 = vst.msk [vmem:[#allocation3 + $0x28] sm:$0xff] %vm196_vm0, %v2673_v2  ;;  %828 = vperm.xlu0 %1649, %v2673_v2   ;;  %v730_v13 = vpop.xlane.xlu0 %729  ;;  %v1094_v2 = vld [vmem:[#allocation5 + $0x20] sm:$0xff] }
 0x27b   :  { %v2690_v51 = vmax.f32 %v2675_v47, %v730_v13  ;;  %v732_v0 = vpop.xlane.xlu1 %731 }
 0x27c   :  { %v2693_v24 = vmax.f32 %v2682_v10, %v732_v0  ;;  %v1093_v10 = vld [vmem:[#allocation5 + $0x18] sm:$0xff] }
 0x27d   :  { %3169 = vst [vmem:[#allocation34_spill] sm:$0xff] %v2690_v51  ;;  %1278 = vst.msk [vmem:[#allocation3 + $0x60] sm:$0xff] %vm196_vm0, %v2690_v51  ;;  %863 = vperm.xlu1 %1650, %v2690_v51  }
 0x27e   :  { %3170 = vst [vmem:[#allocation35_spill] sm:$0xff] %v2693_v24  ;;  %1279 = vst.msk [vmem:[#allocation3 + $0x68] sm:$0xff] %vm196_vm0, %v2693_v24  ;;  %868 = vperm.xlu0 %1649, %v2693_v24   ;;  %v1123_v0 = vpop.xlane.xlu0 %1122 }
 0x27f   :  { %v1154_v13 = vadd.f32 %v1123_v0, %v1090_v12  ;;  %v1233_v19 = vpop.xlane.xlu1 %1232 }
 0x280   :  { %v1249_v15 = vadd.f32 %v1233_v19, %v1201_v9 }
 0x281   :  { %1170 = vst.msk [vmem:[#allocation5] sm:$0xff] %vm196_vm0, %v1154_v13 }
 0x282   :  { %1265 = vst.msk [vmem:[#allocation6 + $0x78] sm:$0xff] %vm196_vm0, %v1249_v15  ;;  %v1127_v51 = vpop.xlane.xlu0 %1126  ;;  %v1111_v15 = vmul.f32 %v2211_v33, %v2499_v41 }
 0x283   :  { %v1156_v47 = vadd.f32 %v1127_v51, %v1092_v52  ;;  %v1125_v7 = vpop.xlane.xlu1 %1124 }
 0x284   :  { %v1155_v3 = vadd.f32 %v1125_v7, %v1091_v25 }
 0x285   :  { %1172 = vst.msk [vmem:[#allocation5 + $0x10] sm:$0xff] %vm196_vm0, %v1156_v47 }
 0x286   :  { %1171 = vst.msk [vmem:[#allocation5 + $0x8] sm:$0xff] %vm196_vm0, %v1155_v3  ;;  %v1131_v24 = vpop.xlane.xlu0 %1130 }
 0x287   :  { %v1158_v12 = vadd.f32 %v1131_v24, %v1094_v2  ;;  %v1129_v0 = vpop.xlane.xlu1 %1128 }
 0x288   :  { %v1157_v19 = vadd.f32 %v1129_v0, %v1093_v10 }
 0x289   :  { %1174 = vst.msk [vmem:[#allocation5 + $0x20] sm:$0xff] %vm196_vm0, %v1158_v12 }
 0x28a   :  { %1173 = vst.msk [vmem:[#allocation5 + $0x18] sm:$0xff] %vm196_vm0, %v1157_v19 }
 0x2a1   :  { %1132 = vadd.xlane.f32.xlu1 %v1111_v15 }
 0x2e0   :  { %v814_v52 = vpop.permute.xlu1 %813 }
 0x2e1   :  { %v883_v25 = vsub.f32 %v2418_v6, %v814_v52  ;;  %v804_v51 = vpop.permute.xlu0 %803 }
 0x2e2   :  { %v881_v7 = vsub.f32 %v2425_v11, %v804_v51 }
 0x2e3   :  { %v901_v47 = vmul.f32 1.442695, %v883_v25 }
 0x2e4   :  { %v897_v3 = vmul.f32 1.442695, %v881_v7  ;;  %v854_v9 = vpop.permute.xlu1 %853 }
 0x2e5   :  { %1715 = vpow2.f32 %v901_v47  ;;  %v891_v2 = vsub.f32 %v2431_v14, %v854_v9  ;;  %v819_v24 = vpop.permute.xlu0 %818 }
 0x2e6   :  { %1717 = vpow2.f32 %v897_v3  ;;  %v884_v10 = vsub.f32 %v2437_v18, %v819_v24 }
 0x2e7   :  { %v917_v13 = vmul.f32 1.442695, %v891_v2 }
 0x2e8   :  { %v903_v12 = vmul.f32 1.442695, %v884_v10  ;;  %v844_v41 = vpop.permute.xlu1 %843 }
 0x2e9   :  { %1719 = vpow2.f32 %v917_v13  ;;  %v889_v0 = vsub.f32 %v2447_v30, %v844_v41  ;;  %v859_v6 = vpop.permute.xlu0 %858 }
 0x2ea   :  { %1721 = vpow2.f32 %v903_v12  ;;  %v892_v11 = vsub.f32 %v2453_v31, %v859_v6 }
 0x2eb   :  { %v913_v19 = vmul.f32 1.442695, %v889_v0 }
 0x2ec   :  { %v919_v15 = vmul.f32 1.442695, %v892_v11  ;;  %v809_v14 = vpop.permute.xlu1 %808 }
 0x2ed   :  { %1723 = vpow2.f32 %v913_v19  ;;  %v849_v52 = vpop.permute.xlu0 %848  ;;  %v882_v47 = vsub.f32 %v2462_v17, %v809_v14 }
 0x2ee   :  { %1725 = vpow2.f32 %v919_v15  ;;  %v890_v25 = vsub.f32 %v2470_v42, %v849_v52 }
 0x2ef   :  { %v1716_v51 = vpop.eup %1715  ;;  %v899_v31 = vmul.f32 1.442695, %v882_v47 }
 0x2f0   :  { %v1718_v18 = vpop.eup %1717  ;;  %v915_v7 = vmul.f32 1.442695, %v890_v25  ;;  %965 = vadd.xlane.f32.xlu0 %v1716_v51  ;;  %v834_v9 = vpop.permute.xlu1 %833  ;;  %v995_v13 = vmul.f32 %v1716_v51, %v2204_v58 }
 0x2f1   :  { %961 = vadd.xlane.f32.xlu1 %v1718_v18  ;;  %v839_v2 = vpop.permute.xlu0 %838  ;;  %v887_v17 = vsub.f32 %v2476_v16, %v834_v9 }
 0x2f2   :  { %1727 = vpow2.f32 %v915_v7  ;;  %v888_v0 = vsub.f32 %v2481_v32, %v839_v2 }
 0x2f3   :  { %v1720_v30 = vpop.eup %1719  ;;  %1729 = vpow2.f32 %v899_v31  ;;  %v909_v15 = vmul.f32 1.442695, %v887_v17 }
 0x2f4   :  { %v1722_v3 = vpop.eup %1721  ;;  %981 = vadd.xlane.f32.xlu0 %v1720_v30  ;;  %v874_v42 = vpop.permute.xlu1 %873  ;;  %v1003_v6 = vmul.f32 %v1720_v30, %v2260_v55  ;;  %v911_v58 = vmul.f32 1.442695, %v888_v0 }
 0x2f5   :  { %967 = vadd.xlane.f32.xlu1 %v1722_v3  ;;  %v879_v12 = vpop.permute.xlu0 %878  ;;  %v996_v11 = vmul.f32 %v1722_v3, %v2189_v36  ;;  %v895_v52 = vsub.f32 %v2492_v44, %v874_v42  ;;  %1731 = vpow2.f32 %v909_v15  ;;  %v993_v44 = vmul.f32 %v1718_v18, %v2199_v43 }
 0x2f6   :  { %v896_v25 = vsub.f32 %v2497_v49, %v879_v12  ;;  %1733 = vpow2.f32 %v911_v58  ;;  %v1095_v58 = vld [vmem:[#allocation5 + $0x28] sm:$0xff] }
 0x2f7   :  { %v1724_v24 = vpop.eup %1723  ;;  %v925_v32 = vmul.f32 1.442695, %v895_v52 }
 0x2f8   :  { %v1726_v10 = vpop.eup %1725  ;;  %977 = vadd.xlane.f32.xlu0 %v1724_v24  ;;  %v824_v19 = vpop.permute.xlu1 %823  ;;  %v927_v36 = vmul.f32 1.442695, %v896_v25  ;;  %v1112_v25 = vmul.f32 %v2225_v45, %v2458_v34  ;;  %v1117_v34 = vmul.f32 %v2253_v54, %v2442_v27 }
 0x2f9   :  { %983 = vadd.xlane.f32.xlu1 %v1726_v10  ;;  %v829_v14 = vpop.permute.xlu0 %828  ;;  %v1004_v16 = vmul.f32 %v1726_v10, %v2253_v54  ;;  %v885_v7 = vsub.f32 %v2505_v23, %v824_v19  ;;  %1735 = vpow2.f32 %v925_v32  ;;  %v1001_v10 = vmul.f32 %v1724_v24, %v2247_v40 }
 0x2fa   :  { %v886_v47 = vsub.f32 %v2510_v57, %v829_v14  ;;  %1737 = vpow2.f32 %v927_v36  ;;  %v3171_v54 = vsub.f32 %v2545_v4, %v2550_v28  ;;  %v3177_v4 = vld [vmem:[#allocation10_spill] sm:$0xff]  ;;  %v3178_v28 = vld [vmem:[#allocation11_spill] sm:$0xff]  ;;  %v3180_v36 = vld [vmem:[#allocation16_spill] sm:$0xff] }
 0x2fb   :  { %v905_v49 = vmul.f32 1.442695, %v885_v7  ;;  %v3179_v7 = vsub.f32 %v3177_v4, %v3178_v28  ;;  %v2807_v28 = vld [vmem:[#allocation6 + $0x8] sm:$0xff] }
 0x2fc   :  { %v1728_v41 = vpop.eup %1727  ;;  %1013 = vadd.xlane.f32.xlu0 %v995_v13  ;;  %v864_v30 = vpop.permute.xlu1 %863  ;;  %v907_v2 = vmul.f32 1.442695, %v886_v47  ;;  %vm1430_vm5 = vcmp.gt.f32.partialorder %v2807_v28, 0.0 }
 0x2fd   :  { %979 = vadd.xlane.f32.xlu1 %v1728_v41  ;;  %v1730_v51 = vpop.eup %1729  ;;  %v869_v3 = vpop.permute.xlu0 %868  ;;  %v893_v31 = vsub.f32 %v2521_v63, %v864_v30  ;;  %v1002_v57 = vmul.f32 %v1728_v41, %v2239_v50  ;;  %1739 = vpow2.f32 %v905_v49  ;;  %v3184_v49 = vld [vmem:[#allocation14_spill] sm:$0xff] }
 0x2fe   :  { %v994_v9 = vmul.f32 %v1730_v51, %v2177_v21  ;;  %v894_v23 = vsub.f32 %v2528_v46, %v869_v3  ;;  %1741 = vpow2.f32 %v907_v2  ;;  %v931_v3 = vld [vmem:[#allocation4 + $0x10] sm:$0xff] }
 0x2ff   :  { %v921_v43 = vmul.f32 1.442695, %v893_v31  ;;  %v1732_v18 = vpop.eup %1731 }
 0x300   :  { %1029 = vadd.xlane.f32.xlu0 %v1003_v6  ;;  %v923_v21 = vmul.f32 1.442695, %v894_v23  ;;  %v1734_v42 = vpop.eup %1733  ;;  %v999_v17 = vmul.f32 %v1732_v18, %v2225_v45  ;;  %v1116_v45 = vmul.f32 %v2260_v55, %v2413_v29  ;;  %v773_v55 = vmul.f32 1.442695, %v3171_v54 }
 0x301   :  { %1015 = vadd.xlane.f32.xlu1 %v996_v11  ;;  %1743 = vpow2.f32 %v921_v43  ;;  %v1000_v0 = vmul.f32 %v1734_v42, %v2233_v48 }
 0x302   :  { %1745 = vpow2.f32 %v923_v21 }
 0x303   :  { %v1736_v63 = vpop.eup %1735  ;;  %1747 = vpow2.f32 %v773_v55  ;;  %v2801_v55 = vld [vmem:[#allocation6 + $0x18] sm:$0xff] }
 0x304   :  { %963 = vadd.xlane.f32.xlu0 %v1730_v51  ;;  %v1738_v13 = vpop.eup %1737  ;;  %v1007_v6 = vmul.f32 %v1736_v63, %v2279_v60  ;;  %vm1432_vm4 = vcmp.gt.f32.partialorder %v2801_v55, 0.0 }
 0x305   :  { %1031 = vadd.xlane.f32.xlu1 %v1004_v16  ;;  %v1008_v11 = vmul.f32 %v1738_v13, %v2536_v5  ;;  %v1113_v16 = vmul.f32 %v2233_v48, %v2464_v37  ;;  %v1118_v48 = vmul.f32 %v2271_v56, %v2512_v61  ;;  %v1119_v37 = vmul.f32 %v2266_v22, %v2514_v62 }
 0x307   :  { %v1740_v46 = vpop.eup %1739 }
 0x308   :  { %1009 = vadd.xlane.f32.xlu0 %v993_v44  ;;  %v1742_v24 = vpop.eup %1741  ;;  %v997_v19 = vmul.f32 %v1740_v46, %v2217_v38  ;;  %v1115_v38 = vmul.f32 %v2239_v50, %v2456_v35  ;;  %v1120_v50 = vmul.f32 %v2279_v60, %v2483_v59  ;;  %v3174_v59 = vld [vmem:[#allocation13_spill] sm:$0xff] }
 0x309   :  { %1011 = vadd.xlane.f32.xlu1 %v994_v9  ;;  %v998_v15 = vmul.f32 %v1742_v24, %v2211_v33  ;;  %v1114_v33 = vmul.f32 %v2247_v40, %v2439_v20  ;;  %v1121_v40 = vmul.f32 %v2536_v5, %v2485_v39  ;;  %v3173_v20 = vsub.f32 %v2562_v8, %v2573_v53  ;;  %v3175_v39 = vld [vmem:[#allocation15_spill] sm:$0xff]  ;;  %v3181_v8 = vld [vmem:[#allocation18_spill] sm:$0xff]  ;;  %v3183_v9 = vld [vmem:[#allocation12_spill] sm:$0xff] }
 0x30a   :  { %v3176_v61 = vsub.f32 %v3174_v59, %v3175_v39  ;;  %v3182_v53 = vsub.f32 %v3180_v36, %v3181_v8  ;;  %v3185_v31 = vsub.f32 %v3183_v9, %v3184_v49  ;;  %v937_v59 = vld [vmem:[#allocation4 + $0x40] sm:$0xff] }
 0x30b   :  { %v1744_v12 = vpop.eup %1743  ;;  %v775_v27 = vmul.f32 1.442695, %v3173_v20 }
 0x30c   :  { %1025 = vadd.xlane.f32.xlu0 %v1001_v10  ;;  %v1746_v41 = vpop.eup %1745  ;;  %v1005_v52 = vmul.f32 %v1744_v12, %v2271_v56  ;;  %v3172_v56 = vsub.f32 %v2555_v1, %v2570_v26  ;;  %v791_v62 = vmul.f32 1.442695, %v3176_v61  ;;  %v769_v1 = vmul.f32 1.442695, %v3179_v7  ;;  %v3186_v10 = vld [vmem:[#allocation17_spill] sm:$0xff] }
 0x30d   :  { %1027 = vadd.xlane.f32.xlu1 %v1002_v57  ;;  %v1006_v14 = vmul.f32 %v1746_v41, %v2266_v22  ;;  %v771_v47 = vmul.f32 1.442695, %v3182_v53  ;;  %v1748_v44 = vpop.eup %1747  ;;  %v785_v2 = vmul.f32 1.442695, %v3185_v31  ;;  %v3187_v57 = vld [vmem:[#allocation19_spill] sm:$0xff]  ;;  %v3192_v31 = vld [vmem:[#allocation21_spill] sm:$0xff] }
 0x30e   :  { %v789_v29 = vmul.f32 1.442695, %v3172_v56  ;;  %v3188_v43 = vsub.f32 %v3186_v10, %v3187_v57 }
 0x310   :  { %973 = vadd.xlane.f32.xlu0 %v1732_v18  ;;  %1749 = vpow2.f32 %v789_v29  ;;  %v787_v21 = vmul.f32 1.442695, %v3188_v43  ;;  %v947_v18 = vmul.f32 %v1748_v44, %v931_v3  ;;  %v3189_v44 = vld [vmem:[#allocation20_spill] sm:$0xff]  ;;  %v3190_v3 = vld [vmem:[#allocation22_spill] sm:$0xff] }
 0x311   :  { %975 = vadd.xlane.f32.xlu1 %v1734_v42  ;;  %1751 = vpow2.f32 %v775_v27  ;;  %v3191_v9 = vsub.f32 %v3189_v44, %v3190_v3 }
 0x312   :  { %1753 = vpow2.f32 %v791_v62  ;;  %v938_v62 = vld [vmem:[#allocation4 + $0x48] sm:$0xff] }
 0x313   :  { %1755 = vpow2.f32 %v769_v1  ;;  %v781_v49 = vmul.f32 1.442695, %v3191_v9 }
 0x314   :  { %989 = vadd.xlane.f32.xlu0 %v1736_v63  ;;  %1757 = vpow2.f32 %v771_v47 }
 0x315   :  { %991 = vadd.xlane.f32.xlu1 %v1738_v13  ;;  %1759 = vpow2.f32 %v785_v2  ;;  %v3193_v2 = vld [vmem:[#allocation23_spill] sm:$0xff] }
 0x316   :  { %1761 = vpow2.f32 %v787_v21  ;;  %v2828_v21 = vld [vmem:[#allocation6] sm:$0xff] }
 0x317   :  { %vm1429_vm6 = vcmp.gt.f32.partialorder %v2828_v21, 0.0 }
 0x318   :  { %969 = vadd.xlane.f32.xlu0 %v1740_v46  ;;  %v939_v46 = vld [vmem:[#allocation4 + $0x50] sm:$0xff] }
 0x319   :  { %971 = vadd.xlane.f32.xlu1 %v1742_v24 }
 0x31a   :  { %v1750_v13 = vpop.eup %1749 }
 0x31b   :  { %v1752_v24 = vpop.eup %1751 }
 0x31c   :  { %985 = vadd.xlane.f32.xlu0 %v1744_v12 }
 0x31d   :  { %987 = vadd.xlane.f32.xlu1 %v1746_v41  ;;  %v932_v41 = vld [vmem:[#allocation4 + $0x18] sm:$0xff] }
 0x320   :  { %1021 = vadd.xlane.f32.xlu0 %v999_v17 }
 0x321   :  { %1023 = vadd.xlane.f32.xlu1 %v1000_v0  ;;  %v955_v0 = vmul.f32 %v1750_v13, %v939_v46  ;;  %v3195_v13 = vld [vmem:[#allocation24_spill] sm:$0xff]  ;;  %v3196_v46 = vld [vmem:[#allocation26_spill] sm:$0xff] }
 0x324   :  { %1037 = vadd.xlane.f32.xlu0 %v1007_v6 }
 0x325   :  { %1039 = vadd.xlane.f32.xlu1 %v1008_v11 }
 0x328   :  { %1017 = vadd.xlane.f32.xlu0 %v997_v19  ;;  %v948_v19 = vmul.f32 %v1752_v24, %v932_v41  ;;  %v3197_v24 = vsub.f32 %v3195_v13, %v3196_v46 }
 0x329   :  { %1019 = vadd.xlane.f32.xlu1 %v998_v15 }
 0x32c   :  { %1033 = vadd.xlane.f32.xlu0 %v1005_v52  ;;  %v1754_v52 = vpop.eup %1753 }
 0x32d   :  { %1035 = vadd.xlane.f32.xlu1 %v1006_v14 }
 0x32e   :  { %v1133_v51 = vpop.xlane.xlu1 %1132 }
 0x32f   :  { %v1159_v32 = vadd.f32 %v1133_v51, %v1095_v58  ;;  %v940_v58 = vld [vmem:[#allocation4 + $0x58] sm:$0xff] }
 0x330   :  { %1134 = vadd.xlane.f32.xlu0 %v1112_v25 }
 0x331   :  { %1175 = vst.msk [vmem:[#allocation5 + $0x28] sm:$0xff] %vm196_vm0, %v1159_v32  ;;  %1136 = vadd.xlane.f32.xlu1 %v1113_v16  ;;  %v1756_v32 = vpop.eup %1755 }
 0x334   :  { %1138 = vadd.xlane.f32.xlu0 %v1114_v33  ;;  %v956_v33 = vmul.f32 %v1754_v52, %v940_v58 }
 0x335   :  { %1140 = vadd.xlane.f32.xlu1 %v1115_v38 }
 0x338   :  { %1142 = vadd.xlane.f32.xlu0 %v1116_v45  ;;  %v929_v45 = vld [vmem:[#allocation4] sm:$0xff] }
 0x339   :  { %1144 = vadd.xlane.f32.xlu1 %v1117_v34  ;;  %v1758_v34 = vpop.eup %1757  ;;  %v945_v56 = vmul.f32 %v1756_v32, %v929_v45  ;;  %v3202_v45 = vld [vmem:[#allocation30_spill] sm:$0xff] }
 0x33a   :  { %v1760_v20 = vpop.eup %1759 }
 0x33b   :  { %v1762_v39 = vpop.eup %1761 }
 0x33c   :  { %1146 = vadd.xlane.f32.xlu0 %v1118_v48  ;;  %v930_v48 = vld [vmem:[#allocation4 + $0x8] sm:$0xff]  ;;  %v954_v53 = vmul.f32 %v1762_v39, %v938_v62  ;;  %v2869_v39 = vld [vmem:[#allocation6 + $0x38] sm:$0xff] }
 0x33d   :  { %1148 = vadd.xlane.f32.xlu1 %v1119_v37  ;;  %v2799_v37 = vld [vmem:[#allocation6 + $0x10] sm:$0xff]  ;;  %v946_v27 = vmul.f32 %v1758_v34, %v930_v48  ;;  %vm1436_vm10 = vcmp.gt.f32.partialorder %v2869_v39, 0.0 }
 0x33e   :  { %vm1431_vm1 = vcmp.gt.f32.partialorder %v2799_v37, 0.0 }
 0x33f   :  { %v1447_v8 = vsel %vm1431_vm1, %v2799_v37, 1.0 }
 0x340   :  { %1150 = vadd.xlane.f32.xlu0 %v1120_v50 }
 0x341   :  { %1152 = vadd.xlane.f32.xlu1 %v1121_v40 }
 0x37d   :  { %v966_v22 = vpop.xlane.xlu0 %965 }
 0x37e   :  { %v2775_v60 = vpop.xlane.xlu1 %961 }
 0x381   :  { %v982_v35 = vpop.xlane.xlu0 %981 }
 0x382   :  { %v968_v5 = vpop.xlane.xlu1 %967 }
 0x385   :  { %v2783_v26 = vpop.xlane.xlu0 %977 }
 0x386   :  { %v984_v30 = vpop.xlane.xlu1 %983 }
 0x389   :  { %v1014_v23 = vpop.xlane.xlu0 %1013 }
 0x38a   :  { %v1043_v42 = vsub.f32 %v966_v22, %v1014_v23  ;;  %v2794_v63 = vpop.xlane.xlu1 %979  ;;  %v3194_v23 = vsub.f32 %v3192_v31, %v3193_v2 }
 0x38c   :  { %v1059_v12 = vadd.f32 %v1043_v42, %v947_v18  ;;  %v783_v10 = vmul.f32 1.442695, %v3194_v23  ;;  %v935_v23 = vld [vmem:[#allocation4 + $0x30] sm:$0xff] }
 0x38d   :  { %v1030_v17 = vpop.xlane.xlu0 %1029 }
 0x38e   :  { %1076 = vst.msk [vmem:[#allocation4 + $0x10] sm:$0xff] %vm196_vm0, %v1059_v12  ;;  %v1051_v6 = vsub.f32 %v982_v35, %v1030_v17  ;;  %v1016_v11 = vpop.xlane.xlu1 %1015  ;;  %v797_v12 = vmul.f32 1.442695, %v3197_v24 }
 0x38f   :  { %v1044_v15 = vsub.f32 %v968_v5, %v1016_v11  ;;  %v1303_v11 = vld [vmem:[#allocation3 + $0x10] sm:$0xff] }
 0x390   :  { %v1067_v14 = vadd.f32 %v1051_v6, %v955_v0  ;;  %v2843_v6 = vld [vmem:[#allocation6 + $0x28] sm:$0xff] }
 0x391   :  { %v1060_v25 = vadd.f32 %v1044_v15, %v948_v19  ;;  %v964_v51 = vpop.xlane.xlu0 %963  ;;  %v3198_v19 = vld [vmem:[#allocation25_spill] sm:$0xff]  ;;  %v3199_v15 = vld [vmem:[#allocation27_spill] sm:$0xff]  ;;  %vm1434_vm7 = vcmp.gt.f32.partialorder %v2843_v6, 0.0 }
 0x392   :  { %1084 = vst.msk [vmem:[#allocation4 + $0x50] sm:$0xff] %vm196_vm0, %v1067_v14  ;;  %v1032_v16 = vpop.xlane.xlu1 %1031  ;;  %v3200_v52 = vsub.f32 %v3198_v19, %v3199_v15 }
 0x393   :  { %1077 = vst.msk [vmem:[#allocation4 + $0x18] sm:$0xff] %vm196_vm0, %v1060_v25  ;;  %v1052_v38 = vsub.f32 %v984_v30, %v1032_v16  ;;  %v1448_v30 = vsel %vm1432_vm4, %v2801_v55, 1.0  ;;  %v1445_v16 = vsel %vm1429_vm6, %v2828_v21, 1.0 }
 0x394   :  { %v799_v14 = vmul.f32 1.442695, %v3200_v52 }
 0x395   :  { %v1319_v50 = vld [vmem:[#allocation4 + $0x10] sm:$0xff]  ;;  %v1068_v40 = vadd.f32 %v1052_v38, %v956_v33  ;;  %v1010_v54 = vpop.xlane.xlu0 %1009  ;;  %v2853_v33 = vld [vmem:[#allocation6 + $0x20] sm:$0xff] }
 0x396   :  { %1763 = vlog2.f32 %v1319_v50  ;;  %v1041_v29 = vsub.f32 %v2775_v60, %v1010_v54  ;;  %v1012_v22 = vpop.xlane.xlu1 %1011  ;;  %v953_v60 = vmul.f32 %v1760_v20, %v937_v59  ;;  %v3201_v38 = vld [vmem:[#allocation28_spill] sm:$0xff]  ;;  %vm1433_vm8 = vcmp.gt.f32.partialorder %v2853_v33, 0.0 }
 0x397   :  { %1085 = vst.msk [vmem:[#allocation4 + $0x58] sm:$0xff] %vm196_vm0, %v1068_v40  ;;  %v1042_v35 = vsub.f32 %v964_v51, %v1012_v22  ;;  %v3203_v34 = vsub.f32 %v3201_v38, %v3202_v45  ;;  %v2862_v54 = vld [vmem:[#allocation6 + $0x30] sm:$0xff] }
 0x398   :  { %v1057_v61 = vadd.f32 %v1041_v29, %v945_v56  ;;  %v3204_v56 = vld [vmem:[#allocation29_spill] sm:$0xff]  ;;  %v3205_v29 = vld [vmem:[#allocation31_spill] sm:$0xff]  ;;  %vm1435_vm9 = vcmp.gt.f32.partialorder %v2862_v54, 0.0 }
 0x399   :  { %v1058_v5 = vadd.f32 %v1042_v35, %v946_v27  ;;  %v1026_v4 = vpop.xlane.xlu0 %1025  ;;  %v777_v48 = vmul.f32 1.442695, %v3203_v34  ;;  %v3206_v22 = vsub.f32 %v3204_v56, %v3205_v29  ;;  %v1383_v27 = vld [vmem:[#allocation5 + $0x10] sm:$0xff]  ;;  %v1451_v46 = vsel %vm1435_vm9, %v2862_v54, 1.0  ;;  %v2902_v34 = vld [vmem:[#allocation6 + $0x40] sm:$0xff] }
 0x39a   :  { %v1320_v7 = vld [vmem:[#allocation4 + $0x18] sm:$0xff]  ;;  %1074 = vst.msk [vmem:[#allocation4] sm:$0xff] %vm196_vm0, %v1057_v61  ;;  %v1049_v1 = vsub.f32 %v2783_v26, %v1026_v4  ;;  %v1028_v36 = vpop.xlane.xlu1 %1027  ;;  %v1450_v4 = vsel %vm1434_vm7, %v2843_v6, 1.0  ;;  %vm1437_vm11 = vcmp.gt.f32.partialorder %v2902_v34, 0.0 }
 0x39b   :  { %1765 = vlog2.f32 %v1320_v7  ;;  %1075 = vst.msk [vmem:[#allocation4 + $0x8] sm:$0xff] %vm196_vm0, %v1058_v5  ;;  %v1050_v47 = vsub.f32 %v2794_v63, %v1028_v36  ;;  %v1446_v63 = vsel %vm1430_vm5, %v2807_v28, 1.0  ;;  %v779_v20 = vmul.f32 1.442695, %v3206_v22  ;;  %v1304_v61 = vld [vmem:[#allocation3 + $0x18] sm:$0xff]  ;;  %v3207_v7 = vld [vmem:[#allocation32_spill] sm:$0xff] }
 0x39c   :  { %v1065_v26 = vadd.f32 %v1049_v1, %v953_v60  ;;  %1767 = vrcp.f32 %v1447_v8  ;;  %v3208_v60 = vld [vmem:[#allocation34_spill] sm:$0xff]  ;;  %v943_v22 = vld [vmem:[#allocation4 + $0x70] sm:$0xff] }
 0x39d   :  { %v1066_v57 = vadd.f32 %v1050_v47, %v954_v53  ;;  %v2826_v43 = vpop.xlane.xlu0 %973  ;;  %1769 = vrcp.f32 %v1448_v30  ;;  %v3209_v1 = vsub.f32 %v3207_v7, %v3208_v60  ;;  %v3210_v47 = vld [vmem:[#allocation33_spill] sm:$0xff]  ;;  %v3211_v30 = vld [vmem:[#allocation35_spill] sm:$0xff] }
 0x39e   :  { %1082 = vst.msk [vmem:[#allocation4 + $0x40] sm:$0xff] %vm196_vm0, %v1065_v26  ;;  %v2831_v18 = vpop.xlane.xlu1 %975  ;;  %1771 = vpow2.f32 %v781_v49  ;;  %v3212_v44 = vsub.f32 %v3210_v47, %v3211_v30 }
 0x39f   :  { %1083 = vst.msk [vmem:[#allocation4 + $0x48] sm:$0xff] %vm196_vm0, %v1066_v57  ;;  %1773 = vpow2.f32 %v783_v10  ;;  %v793_v36 = vmul.f32 1.442695, %v3209_v1  ;;  %v1449_v57 = vsel %vm1433_vm8, %v2853_v33, 1.0 }
 0x3a0   :  { %v1764_v42 = vpop.eup %1763  ;;  %v795_v3 = vmul.f32 1.442695, %v3212_v44 }
 0x3a1   :  { %v1338_v41 = vmul.f32 0.6931472, %v1764_v42  ;;  %v1317_v17 = vld [vmem:[#allocation4] sm:$0xff]  ;;  %v2841_v0 = vpop.xlane.xlu0 %989  ;;  %v1384_v42 = vld [vmem:[#allocation5 + $0x18] sm:$0xff] }
 0x3a2   :  { %1775 = vlog2.f32 %v1317_v17  ;;  %v1318_v58 = vld [vmem:[#allocation4 + $0x8] sm:$0xff]  ;;  %v2848_v25 = vpop.xlane.xlu1 %991 }
 0x3a3   :  { %v1367_v51 = vadd.f32 %v1338_v41, %v1303_v11  ;;  %1777 = vlog2.f32 %v1318_v58  ;;  %v936_v41 = vld [vmem:[#allocation4 + $0x38] sm:$0xff]  ;;  %v1452_v11 = vsel %vm1436_vm10, %v2869_v39, 1.0 }
 0x3a4   :  { %1779 = vrcp.f32 %v1446_v63 }
 0x3a5   :  { %v1766_v32 = vpop.eup %1765  ;;  %1781 = vpow2.f32 %v797_v12  ;;  %v1399_v50 = vmul.f32 %v1367_v51, %v2799_v37  ;;  %v2860_v40 = vpop.xlane.xlu0 %969 }
 0x3a6   :  { %1783 = vpow2.f32 %v799_v14  ;;  %v1340_v35 = vmul.f32 0.6931472, %v1766_v32  ;;  %v2867_v59 = vpop.xlane.xlu1 %971  ;;  %v1768_v5 = vpop.eup %1767  ;;  %v1301_v14 = vld [vmem:[#allocation3] sm:$0xff] }
 0x3a7   :  { %1785 = vrcp.f32 %v1445_v16  ;;  %v1415_v62 = vsub.f32 %v1383_v27, %v1399_v50  ;;  %v1770_v53 = vpop.eup %1769 }
 0x3a8   :  { %v1368_v8 = vadd.f32 %v1340_v35, %v1304_v61  ;;  %1787 = vpow2.f32 %v777_v48  ;;  %v1772_v26 = vpop.eup %1771  ;;  %v1302_v48 = vld [vmem:[#allocation3 + $0x8] sm:$0xff]  ;;  %v944_v61 = vld [vmem:[#allocation4 + $0x78] sm:$0xff] }
 0x3a9   :  { %v1466_v9 = vmul.f32 %v1768_v5, %v1415_v62  ;;  %v2882_v49 = vpop.xlane.xlu0 %985  ;;  %1789 = vpow2.f32 %v779_v20  ;;  %v1774_v10 = vpop.eup %1773  ;;  %v951_v15 = vmul.f32 %v1772_v26, %v935_v23  ;;  %v2911_v5 = vld [vmem:[#allocation6 + $0x48] sm:$0xff] }
 0x3aa   :  { %v1400_v31 = vmul.f32 %v1368_v8, %v2801_v55  ;;  %v2886_v2 = vpop.xlane.xlu1 %987  ;;  %1791 = vrcp.f32 %v1450_v4  ;;  %v952_v56 = vmul.f32 %v1774_v10, %v936_v41  ;;  %v1327_v4 = vld [vmem:[#allocation4 + $0x50] sm:$0xff]  ;;  %v1325_v55 = vld [vmem:[#allocation4 + $0x40] sm:$0xff]  ;;  %vm1438_vm12 = vcmp.gt.f32.partialorder %v2911_v5, 0.0 }
 0x3ab   :  { %v1495_v63 = vsel %vm1431_vm1, %v1466_v9, 0.0  ;;  %1793 = vpow2.f32 %v793_v36  ;;  %v1381_v36 = vld [vmem:[#allocation5] sm:$0xff] }
 0x3ac   :  { %v1776_v13 = vpop.eup %1775  ;;  %v1511_v24 = vsub.f32 0.0, %v1495_v63  ;;  %v1416_v12 = vsub.f32 %v1384_v42, %v1400_v31  ;;  %1795 = vpow2.f32 %v795_v3  ;;  %v1382_v3 = vld [vmem:[#allocation5 + $0x8] sm:$0xff]  ;;  %v1328_v63 = vld [vmem:[#allocation4 + $0x58] sm:$0xff] }
 0x3ad   :  { %v1778_v17 = vpop.eup %1777  ;;  %v1334_v19 = vmul.f32 0.6931472, %v1776_v13  ;;  %v1022_v52 = vpop.xlane.xlu0 %1021  ;;  %1797 = vrcp.f32 %v1449_v57  ;;  %v1326_v31 = vld [vmem:[#allocation4 + $0x48] sm:$0xff]  ;;  %v933_v57 = vld [vmem:[#allocation4 + $0x20] sm:$0xff] }
 0x3ae   :  { %v2899_v37 = vpop.eup %1779  ;;  %v1527_v58 = vmul.f32 0.7, %v1511_v24  ;;  %v1468_v51 = vmul.f32 %v1770_v53, %v1416_v12  ;;  %v1336_v16 = vmul.f32 0.6931472, %v1778_v17  ;;  %v1047_v32 = vsub.f32 %v2826_v43, %v1022_v52  ;;  %v1024_v38 = vpop.xlane.xlu1 %1023 }
 0x3af   :  { %v1782_v45 = vpop.eup %1781  ;;  %v1365_v50 = vadd.f32 %v1334_v19, %v1301_v14  ;;  %v1048_v29 = vsub.f32 %v2831_v18, %v1024_v38  ;;  %1799 = vrcp.f32 %v1451_v46  ;;  %v1453_v12 = vsel %vm1437_vm11, %v2902_v34, 1.0  ;;  %v2930_v19 = vld [vmem:[#allocation6 + $0x50] sm:$0xff] }
 0x3b0   :  { %v1784_v20 = vpop.eup %1783  ;;  %1543 = vst.msk [vmem:[%s3118_s4 + $0x10] sm:$0xff] %vm196_vm0, %v1527_v58  ;;  %v1496_v43 = vsel %vm1432_vm4, %v1468_v51, 0.0  ;;  %v1366_v27 = vadd.f32 %v1336_v16, %v1302_v48  ;;  %v1063_v35 = vadd.f32 %v1047_v32, %v951_v15  ;;  %1801 = vrcp.f32 %v1452_v11  ;;  %v2932_v15 = vld [vmem:[#allocation6 + $0x58] sm:$0xff]  ;;  %v941_v48 = vld [vmem:[#allocation4 + $0x60] sm:$0xff] }
 0x3b1   :  { %v1786_v62 = vpop.eup %1785  ;;  %v1512_v18 = vsub.f32 0.0, %v1496_v43  ;;  %v1397_v7 = vmul.f32 %v1365_v50, %v2828_v21  ;;  %v1064_v60 = vadd.f32 %v1048_v29, %v952_v56  ;;  %v1038_v1 = vpop.xlane.xlu0 %1037  ;;  %v959_v53 = vmul.f32 %v1782_v45, %v943_v22  ;;  %v942_v29 = vld [vmem:[#allocation4 + $0x68] sm:$0xff] }
 0x3b2   :  { %v1398_v8 = vmul.f32 %v1366_v27, %v2807_v28  ;;  %1080 = vst.msk [vmem:[#allocation4 + $0x30] sm:$0xff] %vm196_vm0, %v1063_v35  ;;  %v1055_v47 = vsub.f32 %v2841_v0, %v1038_v1  ;;  %v1040_v30 = vpop.xlane.xlu1 %1039  ;;  %v1788_v44 = vpop.eup %1787  ;;  %v960_v23 = vmul.f32 %v1784_v20, %v944_v61  ;;  %1803 = vlog2.f32 %v1327_v4  ;;  %v934_v0 = vld [vmem:[#allocation4 + $0x28] sm:$0xff] }
 0x3b3   :  { %v1528_v9 = vmul.f32 0.7, %v1512_v18  ;;  %v1413_v26 = vsub.f32 %v1381_v36, %v1397_v7  ;;  %1081 = vst.msk [vmem:[#allocation4 + $0x38] sm:$0xff] %vm196_vm0, %v1064_v60  ;;  %v1056_v10 = vsub.f32 %v2848_v25, %v1040_v30  ;;  %v1790_v42 = vpop.eup %1789  ;;  %1805 = vlog2.f32 %v1325_v55  ;;  %v2956_v7 = vld [vmem:[#allocation6 + $0x60] sm:$0xff]  ;;  %v2958_v60 = vld [vmem:[#allocation6 + $0x68] sm:$0xff]  ;;  %v1096_v55 = vld [vmem:[#allocation5 + $0x30] sm:$0xff] }
 0x3b4   :  { %v1414_v13 = vsub.f32 %v1382_v3, %v1398_v8  ;;  %v1071_v46 = vadd.f32 %v1055_v47, %v959_v53  ;;  %v2921_v24 = vpop.eup %1791  ;;  %1807 = vlog2.f32 %v1326_v31  ;;  %v949_v14 = vmul.f32 %v1788_v44, %v933_v57  ;;  %v1097_v53 = vld [vmem:[#allocation5 + $0x38] sm:$0xff]  ;;  %v2979_v57 = vld [vmem:[#allocation6 + $0x70] sm:$0xff] }
 0x3b5   :  { %1544 = vst.msk [vmem:[%s3118_s4 + $0x18] sm:$0xff] %vm196_vm0, %v1528_v9  ;;  %v1462_v25 = vmul.f32 %v1786_v62, %v1413_v26  ;;  %v1072_v41 = vadd.f32 %v1056_v10, %v960_v23  ;;  %v1018_v17 = vpop.xlane.xlu0 %1017  ;;  %v1794_v11 = vpop.eup %1793  ;;  %1809 = vlog2.f32 %v1328_v63  ;;  %v950_v38 = vmul.f32 %v1790_v42, %v934_v0  ;;  %v1098_v63 = vld [vmem:[#allocation5 + $0x40] sm:$0xff]  ;;  %v1099_v0 = vld [vmem:[#allocation5 + $0x48] sm:$0xff] }
 0x3b6   :  { %v1464_v52 = vmul.f32 %v2899_v37, %v1414_v13  ;;  %1088 = vst.msk [vmem:[#allocation4 + $0x70] sm:$0xff] %vm196_vm0, %v1071_v46  ;;  %v1045_v58 = vsub.f32 %v2860_v40, %v1018_v17  ;;  %v1020_v51 = vpop.xlane.xlu1 %1019  ;;  %v1796_v16 = vpop.eup %1795  ;;  %v1454_v37 = vsel %vm1438_vm12, %v2911_v5, 1.0  ;;  %vm1439_vm13 = vcmp.gt.f32.partialorder %v2930_v19, 0.0  ;;  %v2982_v46 = vld [vmem:[#allocation6 + $0x78] sm:$0xff] }
 0x3b7   :  { %v1493_v32 = vsel %vm1429_vm6, %v1462_v25, 0.0  ;;  %1089 = vst.msk [vmem:[#allocation4 + $0x78] sm:$0xff] %vm196_vm0, %v1072_v41  ;;  %v1046_v45 = vsub.f32 %v2867_v59, %v1020_v51  ;;  %v2946_v22 = vpop.eup %1797  ;;  %vm1440_vm14 = vcmp.gt.f32.partialorder %v2932_v15, 0.0  ;;  %v957_v28 = vmul.f32 %v1794_v11, %v941_v48 }
 0x3b8   :  { %v1509_v50 = vsub.f32 0.0, %v1493_v32  ;;  %v1494_v40 = vsel %vm1430_vm5, %v1464_v52, 0.0  ;;  %v1061_v56 = vadd.f32 %v1045_v58, %v949_v14  ;;  %v958_v36 = vmul.f32 %v1796_v16, %v942_v29  ;;  %v1311_v29 = vld [vmem:[#allocation3 + $0x50] sm:$0xff] }
 0x3b9   :  { %v1510_v21 = vsub.f32 0.0, %v1494_v40  ;;  %v1323_v20 = vld [vmem:[#allocation4 + $0x30] sm:$0xff]  ;;  %v1062_v59 = vadd.f32 %v1046_v45, %v950_v38  ;;  %v1034_v43 = vpop.xlane.xlu0 %1033  ;;  %v2950_v27 = vpop.eup %1799  ;;  %v1455_v47 = vsel %vm1439_vm13, %v2930_v19, 1.0  ;;  %v1456_v30 = vsel %vm1440_vm14, %v2932_v15, 1.0 }
 0x3ba   :  { %v1525_v35 = vmul.f32 0.7, %v1509_v50  ;;  %1811 = vlog2.f32 %v1323_v20  ;;  %v1324_v61 = vld [vmem:[#allocation4 + $0x38] sm:$0xff]  ;;  %1078 = vst.msk [vmem:[#allocation4 + $0x20] sm:$0xff] %vm196_vm0, %v1061_v56  ;;  %v1053_v62 = vsub.f32 %v2882_v49, %v1034_v43  ;;  %v1036_v4 = vpop.xlane.xlu1 %1035  ;;  %v2954_v18 = vpop.eup %1801  ;;  %vm1441_vm15 = vcmp.gt.f32.partialorder %v2956_v7, 0.0  ;;  %v1100_v38 = vld [vmem:[#allocation5 + $0x50] sm:$0xff] }
 0x3bb   :  { %v1526_v1 = vmul.f32 0.7, %v1510_v21  ;;  %1813 = vlog2.f32 %v1324_v61  ;;  %1079 = vst.msk [vmem:[#allocation4 + $0x28] sm:$0xff] %vm196_vm0, %v1062_v59  ;;  %v1054_v8 = vsub.f32 %v2886_v2, %v1036_v4  ;;  %vm1442_vm2 = vcmp.gt.f32.partialorder %v2958_v60, 0.0  ;;  %v1309_v21 = vld [vmem:[#allocation3 + $0x40] sm:$0xff]  ;;  %v1310_v61 = vld [vmem:[#allocation3 + $0x48] sm:$0xff] }
 0x3bc   :  { %1815 = vrcp.f32 %v1453_v12  ;;  %1541 = vst.msk [vmem:[%s3118_s4] sm:$0xff] %vm196_vm0, %v1525_v35  ;;  %v1069_v49 = vadd.f32 %v1053_v62, %v957_v28  ;;  %v1804_v9 = vpop.eup %1803  ;;  %v1457_v25 = vsel %vm1441_vm15, %v2956_v7, 1.0  ;;  %v1458_v41 = vsel %vm1442_vm2, %v2958_v60, 1.0  ;;  %v1307_v28 = vld [vmem:[#allocation3 + $0x30] sm:$0xff] }
 0x3bd   :  { %1817 = vrcp.f32 %v1454_v37  ;;  %1542 = vst.msk [vmem:[%s3118_s4 + $0x8] sm:$0xff] %vm196_vm0, %v1526_v1  ;;  %v1331_v2 = vld [vmem:[#allocation4 + $0x70] sm:$0xff]  ;;  %v1070_v44 = vadd.f32 %v1054_v8, %v958_v36  ;;  %v1135_v3 = vpop.xlane.xlu0 %1134  ;;  %v1806_v10 = vpop.eup %1805  ;;  %vm1443_vm3 = vcmp.gt.f32.partialorder %v2979_v57, 0.0  ;;  %vm1444_vm1 = vcmp.gt.f32.partialorder %v2982_v46, 0.0  ;;  %v1101_v37 = vld [vmem:[#allocation5 + $0x58] sm:$0xff] }
 0x3be   :  { %1819 = vlog2.f32 %v1331_v2  ;;  %v1332_v26 = vld [vmem:[#allocation4 + $0x78] sm:$0xff]  ;;  %1086 = vst.msk [vmem:[#allocation4 + $0x60] sm:$0xff] %vm196_vm0, %v1069_v49  ;;  %v1160_v31 = vadd.f32 %v1135_v3, %v1096_v55  ;;  %v1137_v23 = vpop.xlane.xlu1 %1136  ;;  %v1808_v13 = vpop.eup %1807  ;;  %v1350_v14 = vmul.f32 0.6931472, %v1806_v10  ;;  %v1354_v48 = vmul.f32 0.6931472, %v1804_v9 }
 0x3bf   :  { %1821 = vlog2.f32 %v1332_v26  ;;  %1087 = vst.msk [vmem:[#allocation4 + $0x68] sm:$0xff] %vm196_vm0, %v1070_v44  ;;  %v1161_v42 = vadd.f32 %v1137_v23, %v1097_v53  ;;  %v1810_v12 = vpop.eup %1809  ;;  %v1352_v16 = vmul.f32 0.6931472, %v1808_v13  ;;  %v1459_v56 = vsel %vm1443_vm3, %v2979_v57, 1.0  ;;  %v1312_v53 = vld [vmem:[#allocation3 + $0x58] sm:$0xff]  ;;  %v1102_v3 = vld [vmem:[#allocation5 + $0x60] sm:$0xff] }
 0x3c0   :  { %1823 = vrcp.f32 %v1455_v47  ;;  %1176 = vst.msk [vmem:[#allocation5 + $0x30] sm:$0xff] %vm196_vm0, %v1160_v31  ;;  %v1356_v50 = vmul.f32 0.6931472, %v1810_v12  ;;  %v1460_v62 = vsel %vm1444_vm1, %v2982_v46, 1.0  ;;  %v1373_v36 = vadd.f32 %v1350_v14, %v1309_v21  ;;  %v1308_v47 = vld [vmem:[#allocation3 + $0x38] sm:$0xff]  ;;  %v1103_v10 = vld [vmem:[#allocation5 + $0x68] sm:$0xff] }
 0x3c1   :  { %1825 = vrcp.f32 %v1456_v30  ;;  %v1321_v17 = vld [vmem:[#allocation4 + $0x20] sm:$0xff]  ;;  %1177 = vst.msk [vmem:[#allocation5 + $0x38] sm:$0xff] %vm196_vm0, %v1161_v42  ;;  %v1139_v11 = vpop.xlane.xlu0 %1138  ;;  %v1374_v2 = vadd.f32 %v1352_v16, %v1310_v61  ;;  %v1375_v31 = vadd.f32 %v1354_v48, %v1311_v29 }
 0x3c2   :  { %1827 = vlog2.f32 %v1321_v17  ;;  %v1322_v52 = vld [vmem:[#allocation4 + $0x28] sm:$0xff]  ;;  %v1162_v58 = vadd.f32 %v1139_v11, %v1098_v63  ;;  %v1141_v51 = vpop.xlane.xlu1 %1140  ;;  %v1376_v23 = vadd.f32 %v1356_v50, %v1312_v53  ;;  %v1405_v17 = vmul.f32 %v1373_v36, %v2902_v34  ;;  %v1315_v50 = vld [vmem:[#allocation3 + $0x70] sm:$0xff]  ;;  %v1316_v36 = vld [vmem:[#allocation3 + $0x78] sm:$0xff] }
 0x3c3   :  { %1829 = vlog2.f32 %v1322_v52  ;;  %v1163_v32 = vadd.f32 %v1141_v51, %v1099_v0  ;;  %v1407_v21 = vmul.f32 %v1375_v31, %v2930_v19  ;;  %v1105_v34 = vld [vmem:[#allocation5 + $0x78] sm:$0xff] }
 0x3c4   :  { %v1812_v45 = vpop.eup %1811  ;;  %1831 = vrcp.f32 %v1457_v25  ;;  %1178 = vst.msk [vmem:[#allocation5 + $0x40] sm:$0xff] %vm196_vm0, %v1162_v58 }
 0x3c5   :  { %v1814_v40 = vpop.eup %1813  ;;  %1833 = vrcp.f32 %v1458_v41  ;;  %v1329_v20 = vld [vmem:[#allocation4 + $0x60] sm:$0xff]  ;;  %v1346_v59 = vmul.f32 0.6931472, %v1812_v45  ;;  %1179 = vst.msk [vmem:[#allocation5 + $0x48] sm:$0xff] %vm196_vm0, %v1163_v32  ;;  %v1143_v43 = vpop.xlane.xlu0 %1142  ;;  %v1406_v32 = vmul.f32 %v1374_v2, %v2911_v5  ;;  %v1104_v45 = vld [vmem:[#allocation5 + $0x70] sm:$0xff] }
 0x3c6   :  { %v2999_v35 = vpop.eup %1815  ;;  %v1330_v4 = vld [vmem:[#allocation4 + $0x68] sm:$0xff]  ;;  %v1348_v1 = vmul.f32 0.6931472, %v1814_v40  ;;  %v1164_v8 = vadd.f32 %v1143_v43, %v1100_v38  ;;  %v1145_v55 = vpop.xlane.xlu1 %1144  ;;  %1835 = vlog2.f32 %v1329_v20  ;;  %v1408_v20 = vmul.f32 %v1376_v23, %v2932_v15 }
 0x3c7   :  { %v1818_v49 = vpop.eup %1817  ;;  %v1371_v30 = vadd.f32 %v1346_v59, %v1307_v28  ;;  %v1165_v44 = vadd.f32 %v1145_v55, %v1101_v37  ;;  %1837 = vlog2.f32 %v1330_v4  ;;  %v1387_v25 = vld [vmem:[#allocation5 + $0x30] sm:$0xff] }
 0x3c8   :  { %v1820_v9 = vpop.eup %1819  ;;  %v1372_v26 = vadd.f32 %v1348_v1, %v1308_v47  ;;  %1180 = vst.msk [vmem:[#allocation5 + $0x50] sm:$0xff] %vm196_vm0, %v1164_v8  ;;  %1839 = vrcp.f32 %v1459_v56  ;;  %v1388_v51 = vld [vmem:[#allocation5 + $0x38] sm:$0xff]  ;;  %v1305_v8 = vld [vmem:[#allocation3 + $0x20] sm:$0xff] }
 0x3c9   :  { %v1822_v42 = vpop.eup %1821  ;;  %v1403_v63 = vmul.f32 %v1371_v30, %v2862_v54  ;;  %1181 = vst.msk [vmem:[#allocation5 + $0x58] sm:$0xff] %vm196_vm0, %v1165_v44  ;;  %v1147_v13 = vpop.xlane.xlu0 %1146  ;;  %v1362_v0 = vmul.f32 0.6931472, %v1820_v9  ;;  %1841 = vrcp.f32 %v1460_v62  ;;  %v1306_v44 = vld [vmem:[#allocation3 + $0x28] sm:$0xff] }
 0x3ca   :  { %v3007_v12 = vpop.eup %1823  ;;  %v1404_v41 = vmul.f32 %v1372_v26, %v2869_v39  ;;  %v1166_v11 = vadd.f32 %v1147_v13, %v1102_v3  ;;  %v1149_v52 = vpop.xlane.xlu1 %1148  ;;  %v1364_v48 = vmul.f32 0.6931472, %v1822_v42 }
 0x3cb   :  { %v3011_v14 = vpop.eup %1825  ;;  %v1419_v58 = vsub.f32 %v1387_v25, %v1403_v63  ;;  %v1389_v16 = vld [vmem:[#allocation5 + $0x40] sm:$0xff]  ;;  %v1167_v38 = vadd.f32 %v1149_v52, %v1103_v10  ;;  %v1379_v62 = vadd.f32 %v1362_v0, %v1315_v50 }
 0x3cc   :  { %v1828_v37 = vpop.eup %1827  ;;  %v1420_v40 = vsub.f32 %v1388_v51, %v1404_v41  ;;  %v1421_v56 = vsub.f32 %v1389_v16, %v1405_v17  ;;  %v1390_v29 = vld [vmem:[#allocation5 + $0x48] sm:$0xff]  ;;  %1182 = vst.msk [vmem:[#allocation5 + $0x60] sm:$0xff] %vm196_vm0, %v1166_v11  ;;  %v3027_v31 = vadd.f32 %v1364_v48, %v1316_v36  ;;  %v1385_v41 = vld [vmem:[#allocation5 + $0x20] sm:$0xff] }
 0x3cd   :  { %v1830_v59 = vpop.eup %1829  ;;  %v1342_v43 = vmul.f32 0.6931472, %v1828_v37  ;;  %v1474_v61 = vmul.f32 %v2950_v27, %v1419_v58  ;;  %v1422_v28 = vsub.f32 %v1390_v29, %v1406_v32  ;;  %1183 = vst.msk [vmem:[#allocation5 + $0x68] sm:$0xff] %vm196_vm0, %v1167_v38  ;;  %v1151_v4 = vpop.xlane.xlu0 %1150  ;;  %v1386_v16 = vld [vmem:[#allocation5 + $0x28] sm:$0xff]  ;;  %v1313_v29 = vld [vmem:[#allocation3 + $0x60] sm:$0xff] }
 0x3ce   :  { %v3019_v1 = vpop.eup %1831  ;;  %v1344_v55 = vmul.f32 0.6931472, %v1830_v59  ;;  %v1476_v53 = vmul.f32 %v2954_v18, %v1420_v40  ;;  %v1478_v47 = vmul.f32 %v2999_v35, %v1421_v56  ;;  %v1168_v30 = vadd.f32 %v1151_v4, %v1104_v45  ;;  %v1153_v58 = vpop.xlane.xlu1 %1152 }
 0x3cf   :  { %v3023_v2 = vpop.eup %1833  ;;  %v1369_v3 = vadd.f32 %v1342_v43, %v1305_v8  ;;  %v1499_v27 = vsel %vm1435_vm9, %v1474_v61, 0.0  ;;  %v1480_v9 = vmul.f32 %v1818_v49, %v1422_v28  ;;  %v1391_v26 = vld [vmem:[#allocation5 + $0x50] sm:$0xff]  ;;  %v1169_v43 = vadd.f32 %v1153_v58, %v1105_v34  ;;  %v1314_v61 = vld [vmem:[#allocation3 + $0x68] sm:$0xff] }
 0x3d0   :  { %v1370_v23 = vadd.f32 %v1344_v55, %v1306_v44  ;;  %v1515_v10 = vsub.f32 0.0, %v1499_v27  ;;  %v1500_v42 = vsel %vm1436_vm10, %v1476_v53, 0.0  ;;  %v1501_v18 = vsel %vm1437_vm11, %v1478_v47, 0.0  ;;  %v1392_v35 = vld [vmem:[#allocation5 + $0x58] sm:$0xff]  ;;  %1184 = vst.msk [vmem:[#allocation5 + $0x70] sm:$0xff] %vm196_vm0, %v1168_v30  ;;  %v1836_v63 = vpop.eup %1835 }
 0x3d1   :  { %v1401_v13 = vmul.f32 %v1369_v3, %v2853_v33  ;;  %v1516_v54 = vsub.f32 0.0, %v1500_v42  ;;  %v1517_v0 = vsub.f32 0.0, %v1501_v18  ;;  %v1502_v49 = vsel %vm1438_vm12, %v1480_v9, 0.0  ;;  %v1838_v25 = vpop.eup %1837  ;;  %1185 = vst.msk [vmem:[#allocation5 + $0x78] sm:$0xff] %vm196_vm0, %v1169_v43 }
 0x3d2   :  { %v1402_v17 = vmul.f32 %v1370_v23, %v2843_v6  ;;  %v1531_v39 = vmul.f32 0.7, %v1515_v10  ;;  %v1518_v11 = vsub.f32 0.0, %v1502_v49  ;;  %v1423_v52 = vsub.f32 %v1391_v26, %v1407_v21  ;;  %v1840_v51 = vpop.eup %1839 }
 0x3d3   :  { %v1417_v32 = vsub.f32 %v1385_v41, %v1401_v13  ;;  %v1532_v38 = vmul.f32 0.7, %v1516_v54  ;;  %v1533_v45 = vmul.f32 0.7, %v1517_v0  ;;  %v1424_v48 = vsub.f32 %v1392_v35, %v1408_v20  ;;  %v1842_v37 = vpop.eup %1841  ;;  %v1393_v3 = vld [vmem:[#allocation5 + $0x60] sm:$0xff] }
 0x3d4   :  { %v1418_v50 = vsub.f32 %v1386_v16, %v1402_v17  ;;  %1547 = vst.msk [vmem:[%s3118_s4 + $0x30] sm:$0xff] %vm196_vm0, %v1531_v39  ;;  %v1534_v5 = vmul.f32 0.7, %v1518_v11  ;;  %v1482_v40 = vmul.f32 %v3007_v12, %v1423_v52  ;;  %v1358_v56 = vmul.f32 0.6931472, %v1836_v63  ;;  %v1394_v23 = vld [vmem:[#allocation5 + $0x68] sm:$0xff] }
 0x3d5   :  { %v1470_v21 = vmul.f32 %v2946_v22, %v1417_v32  ;;  %1548 = vst.msk [vmem:[%s3118_s4 + $0x38] sm:$0xff] %vm196_vm0, %v1532_v38  ;;  %1549 = vst.msk [vmem:[%s3118_s4 + $0x40] sm:$0xff] %vm196_vm0, %v1533_v45  ;;  %v1484_v20 = vmul.f32 %v3011_v14, %v1424_v48  ;;  %v1360_v59 = vmul.f32 0.6931472, %v1838_v25  ;;  %v1411_v4 = vmul.f32 %v1379_v62, %v2979_v57 }
 0x3d6   :  { %v1472_v12 = vmul.f32 %v2921_v24, %v1418_v50  ;;  %1550 = vst.msk [vmem:[%s3118_s4 + $0x48] sm:$0xff] %vm196_vm0, %v1534_v5  ;;  %v1503_v22 = vsel %vm1439_vm13, %v1482_v40, 0.0  ;;  %v1377_v28 = vadd.f32 %v1358_v56, %v1313_v29  ;;  %v1412_v13 = vmul.f32 %v3027_v31, %v2982_v46 }
 0x3d7   :  { %v1497_v36 = vsel %vm1433_vm8, %v1470_v21, 0.0  ;;  %v1519_v14 = vsub.f32 0.0, %v1503_v22  ;;  %v1504_v8 = vsel %vm1440_vm14, %v1484_v20, 0.0  ;;  %v1378_v55 = vadd.f32 %v1360_v59, %v1314_v61  ;;  %v1395_v24 = vld [vmem:[#allocation5 + $0x70] sm:$0xff] }
 0x3d8   :  { %v1513_v53 = vsub.f32 0.0, %v1497_v36  ;;  %v1498_v47 = vsel %vm1434_vm7, %v1472_v12, 0.0  ;;  %v1520_v19 = vsub.f32 0.0, %v1504_v8  ;;  %v1409_v30 = vmul.f32 %v1377_v28, %v2956_v7  ;;  %v1396_v49 = vld [vmem:[#allocation5 + $0x78] sm:$0xff] }
 0x3d9   :  { %v1514_v44 = vsub.f32 0.0, %v1498_v47  ;;  %v1535_v62 = vmul.f32 0.7, %v1519_v14  ;;  %v1410_v33 = vmul.f32 %v1378_v55, %v2958_v60  ;;  %v1427_v27 = vsub.f32 %v1395_v24, %v1411_v4 }
 0x3da   :  { %v1529_v9 = vmul.f32 0.7, %v1513_v53  ;;  %v1536_v15 = vmul.f32 0.7, %v1520_v19  ;;  %v1425_v26 = vsub.f32 %v1393_v3, %v1409_v30  ;;  %v1428_v41 = vsub.f32 %v1396_v49, %v1412_v13 }
 0x3db   :  { %v1530_v10 = vmul.f32 0.7, %v1514_v44  ;;  %1551 = vst.msk [vmem:[%s3118_s4 + $0x50] sm:$0xff] %vm196_vm0, %v1535_v62  ;;  %v1426_v6 = vsub.f32 %v1394_v23, %v1410_v33  ;;  %v1490_v42 = vmul.f32 %v1840_v51, %v1427_v27 }
 0x3dc   :  { %1545 = vst.msk [vmem:[%s3118_s4 + $0x20] sm:$0xff] %vm196_vm0, %v1529_v9  ;;  %1552 = vst.msk [vmem:[%s3118_s4 + $0x58] sm:$0xff] %vm196_vm0, %v1536_v15  ;;  %v1486_v18 = vmul.f32 %v3019_v1, %v1425_v26 }
 0x3dd   :  { %1546 = vst.msk [vmem:[%s3118_s4 + $0x28] sm:$0xff] %vm196_vm0, %v1530_v10  ;;  %v1488_v35 = vmul.f32 %v3023_v2, %v1426_v6  ;;  %v1507_v63 = vsel %vm1443_vm3, %v1490_v42, 0.0  ;;  %v1492_v2 = vmul.f32 %v1842_v37, %v1428_v41 }
 0x3de   :  { %v1505_v54 = vsel %vm1441_vm15, %v1486_v18, 0.0  ;;  %v1523_v0 = vsub.f32 0.0, %v1507_v63 }
 0x3df   :  { %v1521_v25 = vsub.f32 0.0, %v1505_v54  ;;  %v1506_v1 = vsel %vm1442_vm2, %v1488_v35, 0.0  ;;  %v1508_v7 = vsel %vm1444_vm1, %v1492_v2, 0.0 }
 0x3e0   :  { %v1522_v17 = vsub.f32 0.0, %v1506_v1  ;;  %v1539_v39 = vmul.f32 0.7, %v1523_v0  ;;  %v1524_v60 = vsub.f32 0.0, %v1508_v7 }
 0x3e1   :  { %v1537_v11 = vmul.f32 0.7, %v1521_v25 }
 0x3e2   :  { %v1538_v52 = vmul.f32 0.7, %v1522_v17  ;;  %1555 = vst.msk [vmem:[%s3118_s4 + $0x70] sm:$0xff] %vm196_vm0, %v1539_v39  ;;  %v1540_v57 = vmul.f32 0.7, %v1524_v60 }
 0x3e3   :  { %1553 = vst.msk [vmem:[%s3118_s4 + $0x60] sm:$0xff] %vm196_vm0, %v1537_v11 }
 0x3e4   :  { %1554 = vst.msk [vmem:[%s3118_s4 + $0x68] sm:$0xff] %vm196_vm0, %v1538_v52  ;;  %1556 = vst.msk [vmem:[%s3118_s4 + $0x78] sm:$0xff] %vm196_vm0, %v1540_v57 }
 0x3e5   :  { %1561 = vsyncpa [#allocation8], 1 }

</bundles_post_ra>
